<compile_context>
chip_gen: v6e
topology: v6e:2x2x1
jax: 0.10.0
libtpu: 0.0.40
codegen_flags: <defaults>
</compile_context>

<pallas_src>
import jax
import jax.numpy as jnp
from jax.experimental import pallas as pl
from jax.experimental.pallas import tpu as pltpu


D_IN, D_H1, D_H2, D_H3, D_OUT = 1400, 512, 128, 32, 2
K_PAD = 1408  # D_IN rounded up to a multiple of 128


def _round_up(x, m):
    return ((x + m - 1) // m) * m


def mlp_kernel(x_ref,
               w1_ref, b1_ref,
               w2_ref, b2_ref,
               w3_ref, b3_ref,
               w4_ref, b4_ref,
               out_ref):
    # ---- Linear(1400->512) + ReLU (bf16 MXU inputs, f32 accumulate/elementwise)
    h = jnp.dot(x_ref[...], w1_ref[...], preferred_element_type=jnp.float32)
    h = jnp.maximum(h + b1_ref[...], 0.0)

    # ---- Linear(512->128) + ReLU
    h = jnp.dot(h.astype(jnp.bfloat16), w2_ref[...],
                preferred_element_type=jnp.float32)
    h = jnp.maximum(h + b2_ref[...], 0.0)

    # ---- Linear(128->32) + ReLU
    h = jnp.dot(h.astype(jnp.bfloat16), w3_ref[...],
                preferred_element_type=jnp.float32)
    h = jnp.maximum(h + b3_ref[...], 0.0)

    # ---- Linear(32->2)
    logits = jnp.dot(h.astype(jnp.bfloat16), w4_ref[...],
                     preferred_element_type=jnp.float32)
    logits = logits + b4_ref[...]

    # ---- Stable softmax over the last (2-class) dim, f32
    m = jnp.max(logits, axis=-1, keepdims=True)
    e = jnp.exp(logits - m)
    denom = jnp.sum(e, axis=-1, keepdims=True)
    out_ref[...] = (e / denom).astype(out_ref.dtype)


def mlp_forward(x, params, *, tile_b=512):
    """x: (B, 1400) float32 -> (B, 2) float32 softmax probabilities."""
    (w1, b1), (w2, b2), (w3, b3), (w4, b4) = params
    B = x.shape[0]

    # Batch tile: big enough to fill the MXU for large B, never larger than
    # (rounded-up) B for small inputs.
    TILE_B = min(tile_b, _round_up(B, 8))
    B_pad = _round_up(B, TILE_B)
    num_tiles = B_pad // TILE_B

    # Zero-pad K 1400 -> 1408 and batch -> B_pad; feed MXU inputs in bf16.
    xp = jnp.zeros((B_pad, K_PAD), jnp.bfloat16)
    xp = xp.at[:B, :D_IN].set(x.astype(jnp.bfloat16))
    w1p = jnp.zeros((K_PAD, D_H1), jnp.bfloat16).at[:D_IN].set(
        w1.astype(jnp.bfloat16))
    w2b = w2.astype(jnp.bfloat16)
    w3b = w3.astype(jnp.bfloat16)
    w4b = w4.astype(jnp.bfloat16)

    # Weights/biases: constant block index across the batch grid -> stay
    # VMEM-resident, no re-DMA per grid step.
    const = lambda shape: pl.BlockSpec(shape, lambda i, _s=shape: (0,) * len(_s))

    flops = 2 * B_pad * (K_PAD * D_H1 + D_H1 * D_H2 + D_H2 * D_H3 + D_H3 * D_OUT)
    bytes_accessed = (
        xp.size * 2
        + (w1p.size + w2b.size + w3b.size + w4b.size) * 2
        + (b1.size + b2.size + b3.size + b4.size) * 4
        + B_pad * D_OUT * 4)

    out = pl.pallas_call(
        mlp_kernel,
        out_shape=jax.ShapeDtypeStruct((B_pad, D_OUT), jnp.float32),
        grid=(num_tiles,),
        in_specs=[
            pl.BlockSpec((TILE_B, K_PAD), lambda i: (i, 0)),
            const(w1p.shape), const(b1.shape),
            const(w2b.shape), const(b2.shape),
            const(w3b.shape), const(b3.shape),
            const(w4b.shape), const(b4.shape),
        ],
        out_specs=pl.BlockSpec((TILE_B, D_OUT), lambda i: (i, 0)),
        compiler_params=pltpu.CompilerParams(
            dimension_semantics=("parallel",),
            vmem_limit_bytes=32 << 20,
        ),
        cost_estimate=pl.CostEstimate(
            flops=flops,
            transcendentals=B_pad * D_OUT,
            bytes_accessed=bytes_accessed),
    )(xp, w1p, b1, w2b, b2, w3b, b3, w4b, b4)

    return out[:B]


def mlp_reference(x, params):
    """Pure-JAX f32 reference matching the PyTorch module."""
    h = x
    for idx, (w, b) in enumerate(params):
        h = h @ w + b
        if idx < 3:
            h = jnp.maximum(h, 0.0)
    return jax.nn.softmax(h, axis=-1)


def init_params(key):
    """PyTorch-Linear-style init: uniform(-1/sqrt(fan_in), 1/sqrt(fan_in)).

    Weights returned as (in_features, out_features), biases as (1, out)."""
    dims = [(D_IN, D_H1), (D_H1, D_H2), (D_H2, D_H3), (D_H3, D_OUT)]
    params = []
    for (fan_in, fan_out) in dims:
        key, kw, kb = jax.random.split(key, 3)
        bound = 1.0 / jnp.sqrt(jnp.float32(fan_in))
        w = jax.random.uniform(kw, (fan_in, fan_out), jnp.float32,
                               minval=-bound, maxval=bound)
        b = jax.random.uniform(kb, (1, fan_out), jnp.float32,
                               minval=-bound, maxval=bound)
        params.append((w, b))
    return params


if __name__ == "__main__":
    key = jax.random.PRNGKey(0)
    key, kx = jax.random.split(key)

    B = 8
    x = jax.random.normal(kx, (B, D_IN), dtype=jnp.float32)
    params = init_params(key)

    out = mlp_forward(x, params)
    out = jax.block_until_ready(out)

    # sanity: shape, softmax rows sum to 1, and matches f32 reference
    # (bf16 MXU inputs => loose tolerance).
    assert out.shape == (B, D_OUT)
    assert bool(jnp.all(jnp.isfinite(out)))
    assert jnp.allclose(jnp.sum(out, axis=-1), 1.0, atol=1e-5)
    ref = mlp_reference(x, params)
    assert jnp.allclose(out, ref, atol=2e-2), float(jnp.max(jnp.abs(out - ref)))

    print("KERNEL_OK")
</pallas_src>

<mosaic_0001>
module attributes {stable_mosaic.version = 11 : i64} {
  func.func @mlp_kernel(%arg0: i32, %arg1: memref<8x1408xbf16, #tpu.memory_space<vmem>>, %arg2: memref<1408x512xbf16, #tpu.memory_space<vmem>>, %arg3: memref<1x512xf32, #tpu.memory_space<vmem>>, %arg4: memref<512x128xbf16, #tpu.memory_space<vmem>>, %arg5: memref<1x128xf32, #tpu.memory_space<vmem>>, %arg6: memref<128x32xbf16, #tpu.memory_space<vmem>>, %arg7: memref<1x32xf32, #tpu.memory_space<vmem>>, %arg8: memref<32x2xbf16, #tpu.memory_space<vmem>>, %arg9: memref<1x2xf32, #tpu.memory_space<vmem>>, %arg10: memref<8x2xf32, #tpu.memory_space<vmem>>) attributes {dimension_semantics = [#tpu.dimension_semantics<parallel>], iteration_bounds = array<i64: 1>, scalar_prefetch = 0 : i64, scratch_operands = 0 : i64, tpu.core_type = #tpu.core_type<tc>, window_params = [{transform_indices = @transform_0, window_bounds = array<i64: 8, 1408>}, {pipeline_mode = #tpu.pipeline_mode<synchronous>, transform_indices = @transform_1, window_bounds = array<i64: 1408, 512>}, {pipeline_mode = #tpu.pipeline_mode<synchronous>, transform_indices = @transform_2, window_bounds = array<i64: 1, 512>}, {pipeline_mode = #tpu.pipeline_mode<synchronous>, transform_indices = @transform_3, window_bounds = array<i64: 512, 128>}, {pipeline_mode = #tpu.pipeline_mode<synchronous>, transform_indices = @transform_4, window_bounds = array<i64: 1, 128>}, {pipeline_mode = #tpu.pipeline_mode<synchronous>, transform_indices = @transform_5, window_bounds = array<i64: 128, 32>}, {pipeline_mode = #tpu.pipeline_mode<synchronous>, transform_indices = @transform_6, window_bounds = array<i64: 1, 32>}, {pipeline_mode = #tpu.pipeline_mode<synchronous>, transform_indices = @transform_7, window_bounds = array<i64: 32, 2>}, {pipeline_mode = #tpu.pipeline_mode<synchronous>, transform_indices = @transform_8, window_bounds = array<i64: 1, 2>}, {transform_indices = @transform_9, window_bounds = array<i64: 8, 2>}]} {
    %c0 = arith.constant 0 : index
    %c0_0 = arith.constant 0 : index
    %0 = vector.load %arg1[%c0, %c0_0] : memref<8x1408xbf16, #tpu.memory_space<vmem>>, vector<8x1408xbf16>
    %c0_1 = arith.constant 0 : index
    %c0_2 = arith.constant 0 : index
    %1 = vector.load %arg2[%c0_1, %c0_2] : memref<1408x512xbf16, #tpu.memory_space<vmem>>, vector<1408x512xbf16>
    %cst = arith.constant dense<0.000000e+00> : vector<8x512xf32>
    %2 = tpu.matmul %0, %1, %cst {dimension_numbers = #tpu.dot_dimension_numbers<[1], [0], [0], [1], [0, 0, 1, 1], [], []>} : vector<8x1408xbf16>, vector<1408x512xbf16>, vector<8x512xf32> -> vector<8x512xf32>
    %c0_3 = arith.constant 0 : index
    %c0_4 = arith.constant 0 : index
    %3 = vector.load %arg3[%c0_3, %c0_4] : memref<1x512xf32, #tpu.memory_space<vmem>>, vector<1x512xf32>
    %4 = vector.broadcast %3 : vector<1x512xf32> to vector<8x512xf32>
    %5 = arith.addf %2, %4 : vector<8x512xf32>
    %cst_5 = arith.constant 0.000000e+00 : f32
    %6 = vector.broadcast %cst_5 : f32 to vector<8x512xf32>
    %7 = arith.maximumf %5, %6 : vector<8x512xf32>
    %8 = arith.truncf %7 : vector<8x512xf32> to vector<8x512xbf16>
    %c0_6 = arith.constant 0 : index
    %c0_7 = arith.constant 0 : index
    %9 = vector.load %arg4[%c0_6, %c0_7] : memref<512x128xbf16, #tpu.memory_space<vmem>>, vector<512x128xbf16>
    %cst_8 = arith.constant dense<0.000000e+00> : vector<8x128xf32>
    %10 = tpu.matmul %8, %9, %cst_8 {dimension_numbers = #tpu.dot_dimension_numbers<[1], [0], [0], [1], [0, 0, 1, 1], [], []>} : vector<8x512xbf16>, vector<512x128xbf16>, vector<8x128xf32> -> vector<8x128xf32>
    %c0_9 = arith.constant 0 : index
    %c0_10 = arith.constant 0 : index
    %11 = vector.load %arg5[%c0_9, %c0_10] : memref<1x128xf32, #tpu.memory_space<vmem>>, vector<1x128xf32>
    %12 = vector.broadcast %11 : vector<1x128xf32> to vector<8x128xf32>
    %13 = arith.addf %10, %12 : vector<8x128xf32>
    %cst_11 = arith.constant 0.000000e+00 : f32
    %14 = vector.broadcast %cst_11 : f32 to vector<8x128xf32>
    %15 = arith.maximumf %13, %14 : vector<8x128xf32>
    %16 = arith.truncf %15 : vector<8x128xf32> to vector<8x128xbf16>
    %c0_12 = arith.constant 0 : index
    %c0_13 = arith.constant 0 : index
    %17 = vector.load %arg6[%c0_12, %c0_13] : memref<128x32xbf16, #tpu.memory_space<vmem>>, vector<128x32xbf16>
    %cst_14 = arith.constant dense<0.000000e+00> : vector<8x32xf32>
    %18 = tpu.matmul %16, %17, %cst_14 {dimension_numbers = #tpu.dot_dimension_numbers<[1], [0], [0], [1], [0, 0, 1, 1], [], []>} : vector<8x128xbf16>, vector<128x32xbf16>, vector<8x32xf32> -> vector<8x32xf32>
    %c0_15 = arith.constant 0 : index
    %c0_16 = arith.constant 0 : index
    %19 = vector.load %arg7[%c0_15, %c0_16] : memref<1x32xf32, #tpu.memory_space<vmem>>, vector<1x32xf32>
    %20 = vector.broadcast %19 : vector<1x32xf32> to vector<8x32xf32>
    %21 = arith.addf %18, %20 : vector<8x32xf32>
    %cst_17 = arith.constant 0.000000e+00 : f32
    %22 = vector.broadcast %cst_17 : f32 to vector<8x32xf32>
    %23 = arith.maximumf %21, %22 : vector<8x32xf32>
    %24 = arith.truncf %23 : vector<8x32xf32> to vector<8x32xbf16>
    %c0_18 = arith.constant 0 : index
    %c0_19 = arith.constant 0 : index
    %25 = vector.load %arg8[%c0_18, %c0_19] : memref<32x2xbf16, #tpu.memory_space<vmem>>, vector<32x2xbf16>
    %cst_20 = arith.constant dense<0.000000e+00> : vector<8x2xf32>
    %26 = tpu.matmul %24, %25, %cst_20 {dimension_numbers = #tpu.dot_dimension_numbers<[1], [0], [0], [1], [0, 0, 1, 1], [], []>} : vector<8x32xbf16>, vector<32x2xbf16>, vector<8x2xf32> -> vector<8x2xf32>
    %c0_21 = arith.constant 0 : index
    %c0_22 = arith.constant 0 : index
    %27 = vector.load %arg9[%c0_21, %c0_22] : memref<1x2xf32, #tpu.memory_space<vmem>>, vector<1x2xf32>
    %28 = vector.broadcast %27 : vector<1x2xf32> to vector<8x2xf32>
    %29 = arith.addf %26, %28 : vector<8x2xf32>
    %cst_23 = arith.constant dense<0xFF800000> : vector<8xf32>
    %30 = vector.multi_reduction <maximumf>, %29, %cst_23 [1] : vector<8x2xf32> to vector<8xf32>
    %31 = vector.shape_cast %30 : vector<8xf32> to vector<8x1xf32>
    %32 = vector.broadcast %31 : vector<8x1xf32> to vector<8x2xf32>
    %33 = arith.subf %29, %32 : vector<8x2xf32>
    %34 = math.exp %33 : vector<8x2xf32>
    %cst_24 = arith.constant dense<0.000000e+00> : vector<8xf32>
    %35 = vector.multi_reduction <add>, %34, %cst_24 [1] : vector<8x2xf32> to vector<8xf32>
    %36 = vector.shape_cast %35 : vector<8xf32> to vector<8x1xf32>
    %37 = vector.broadcast %36 : vector<8x1xf32> to vector<8x2xf32>
    %38 = arith.divf %34, %37 : vector<8x2xf32>
    %c0_25 = arith.constant 0 : index
    %c0_26 = arith.constant 0 : index
    %39 = vector.load %arg10[%c0_25, %c0_26] : memref<8x2xf32, #tpu.memory_space<vmem>>, vector<8x2xf32>
    tpu.vector_store %arg10[%c0_25, %c0_26], %38 {strides = array<i32>} : memref<8x2xf32, #tpu.memory_space<vmem>>, vector<8x2xf32>,
    return
  }
  func.func @transform_0(%arg0: i32) -> (i32, i32) {
    %c0_i32 = arith.constant 0 : i32
    %c0_i32_0 = arith.constant 0 : i32
    return %arg0, %c0_i32 : i32, i32
  }
  func.func @transform_1(%arg0: i32) -> (i32, i32) {
    %c0_i32 = arith.constant 0 : i32
    %c0_i32_0 = arith.constant 0 : i32
    %c0_i32_1 = arith.constant 0 : i32
    return %c0_i32, %c0_i32_0 : i32, i32
  }
  func.func @transform_2(%arg0: i32) -> (i32, i32) {
    %c0_i32 = arith.constant 0 : i32
    %c0_i32_0 = arith.constant 0 : i32
    %c0_i32_1 = arith.constant 0 : i32
    return %c0_i32, %c0_i32_0 : i32, i32
  }
  func.func @transform_3(%arg0: i32) -> (i32, i32) {
    %c0_i32 = arith.constant 0 : i32
    %c0_i32_0 = arith.constant 0 : i32
    %c0_i32_1 = arith.constant 0 : i32
    return %c0_i32, %c0_i32_0 : i32, i32
  }
  func.func @transform_4(%arg0: i32) -> (i32, i32) {
    %c0_i32 = arith.constant 0 : i32
    %c0_i32_0 = arith.constant 0 : i32
    %c0_i32_1 = arith.constant 0 : i32
    return %c0_i32, %c0_i32_0 : i32, i32
  }
  func.func @transform_5(%arg0: i32) -> (i32, i32) {
    %c0_i32 = arith.constant 0 : i32
    %c0_i32_0 = arith.constant 0 : i32
    %c0_i32_1 = arith.constant 0 : i32
    return %c0_i32, %c0_i32_0 : i32, i32
  }
  func.func @transform_6(%arg0: i32) -> (i32, i32) {
    %c0_i32 = arith.constant 0 : i32
    %c0_i32_0 = arith.constant 0 : i32
    %c0_i32_1 = arith.constant 0 : i32
    return %c0_i32, %c0_i32_0 : i32, i32
  }
  func.func @transform_7(%arg0: i32) -> (i32, i32) {
    %c0_i32 = arith.constant 0 : i32
    %c0_i32_0 = arith.constant 0 : i32
    %c0_i32_1 = arith.constant 0 : i32
    return %c0_i32, %c0_i32_0 : i32, i32
  }
  func.func @transform_8(%arg0: i32) -> (i32, i32) {
    %c0_i32 = arith.constant 0 : i32
    %c0_i32_0 = arith.constant 0 : i32
    %c0_i32_1 = arith.constant 0 : i32
    return %c0_i32, %c0_i32_0 : i32, i32
  }
  func.func @transform_9(%arg0: i32) -> (i32, i32) {
    %c0_i32 = arith.constant 0 : i32
    %c0_i32_0 = arith.constant 0 : i32
    return %arg0, %c0_i32 : i32, i32
  }
}

</mosaic_0001>

<bundles_post_ra>
// kernel: tpu_custom_call.1
= control target key start
LH: loop header
LB: loop body
LE: loop exit
PB: predicated region body
PF: predicated region fallthrough
CT: control target
= control target key end

     0   :  { %14 = vsyncpa [#allocation3], 0  ;;  %s4804_s0 = inlined_call_operand.hbm [shape: bf16[8,1408], index: 0, kind: input, shape index: {}]   ;;  %s4805_s1 = inlined_call_operand.hbm [shape: bf16[1408,512], index: 1, kind: input, shape index: {}]   ;;  %s4806_s2 = inlined_call_operand.hbm [shape: f32[1,512], index: 2, kind: input, shape index: {}]   ;;  %s4807_s3 = inlined_call_operand.hbm [shape: bf16[512,128], index: 3, kind: input, shape index: {}]   ;;  %s4808_s4 = inlined_call_operand.hbm [shape: f32[1,128], index: 4, kind: input, shape index: {}]   ;;  %s4809_s5 = inlined_call_operand.vmem [shape: bf16[128,32], index: 5, kind: input, shape index: {}]   ;;  %s4810_s6 = inlined_call_operand.hbm [shape: f32[1,32], index: 6, kind: input, shape index: {}]   ;;  %s4811_s7 = inlined_call_operand.vmem [shape: bf16[32,2], index: 7, kind: input, shape index: {}]   ;;  %s4812_s8 = inlined_call_operand.hbm [shape: f32[1,2], index: 8, kind: input, shape index: {}]   ;;  %s4813_s9 = inlined_call_operand.vmem [shape: f32[8,2], index: 9, kind: output, shape index: {}]  }
   0x1   :  { %15 = vsyncpa [#allocation5], 0 }
   0x2   :  { %16 = vsyncpa [#allocation8], 0 }
   0x3   :  { %17 = vsyncpa [#allocation11], 0  ;;  %s4584_s30 = smov [#allocation4]  }
   0x4   :  { %s33_s10 = sshll.u32 %s4584_s30, 4  ;;  %s34_s10 = int_to_ptr.vmem [resolvable:$true] %s33_s10 }
   0x5   :  { %s4444_s11 = scalar_lea.vmem %s34_s10, 45056  ;;  %p4449_p1 = scmp.lt.s32.totalorder %s34_s10, %s34_s10 }
   0x6   :  { %p4445_p0 = scmp.ne.s32.totalorder %s34_s10, %s4444_s11  ;;  %p4450_p2 = scmp.lt.s32.totalorder %s4444_s11, %s4444_s11 }
   0x8   :  { %p4451_p3 = por %p4450_p2, %p4449_p1 }
   0xa   :  { %p4452_p4 = pnand %p4451_p3, %p4445_p0 }
   0xc   :  { %4455 = shalt.err (!%p4452_p4)
}
   0xd   :  { %s4585_s12 = smov 256   ;;  %s4586_s13 = smov 16  }
   0xe   :  { %39 = dma.hbm_to_vmem [thread:$0]  %s4805_s1, 45056, %s34_s10, [#allocation5], %s4585_s12, %s4585_s12, %s4586_s13  }
   0xf   :  { %s4587_s16 = smov [#allocation7]  }
  0x10   :  { %s55_s17 = sshll.u32 %s4587_s16, 4  ;;  %s56_s17 = int_to_ptr.vmem [resolvable:$true] %s55_s17 }
  0x11   :  { %s4464_s18 = scalar_lea.vmem %s56_s17, 4096  ;;  %p4469_p6 = scmp.lt.s32.totalorder %s56_s17, %s56_s17 }
  0x12   :  { %p4465_p5 = scmp.ne.s32.totalorder %s56_s17, %s4464_s18  ;;  %p4470_p7 = scmp.lt.s32.totalorder %s4464_s18, %s4464_s18 }
  0x14   :  { %p4471_p8 = por %p4470_p7, %p4469_p6 }
  0x16   :  { %p4472_p9 = pnand %p4471_p8, %p4465_p5 }
  0x18   :  { %4475 = shalt.err (!%p4472_p9)
}
  0x19   :  { %s4588_s19 = smov 64   ;;  %s4589_s20 = smov 4  }
  0x1a   :  { %61 = dma.hbm_to_vmem [thread:$0]  %s4807_s3, 4096, %s56_s17, [#allocation8], %s4588_s19, %s4588_s19, %s4589_s20  }
  0x1b   :  { %s4590_s23 = smov [#allocation10]   ;;  %s4591_s25 = smov [#allocation2]  }
  0x1c   :  { %s80_s24 = sshll.u32 %s4590_s23, 4  ;;  %s24_s1 = sshll.u32 %s4591_s25, 4  ;;  %s81_s24 = int_to_ptr.vmem [resolvable:$true] %s80_s24  ;;  %s25_s1 = int_to_ptr.vmem [resolvable:$true] %s24_s1 }
  0x1d   :  { %s4484_s26 = scalar_lea.vmem %s81_s24, 16  ;;  %s4488_s27 = scalar_lea.vmem %s81_s24, 32 }
  0x1e   :  { %p4485_p10 = scmp.ne.s32.totalorder %s81_s24, %s4484_s26  ;;  %p4489_p11 = scmp.lt.s32.totalorder %s81_s24, %s81_s24 }
  0x1f   :  { %p4490_p12 = scmp.lt.s32.totalorder %s4488_s27, %s4484_s26 }
  0x21   :  { %p4491_p13 = por %p4490_p12, %p4489_p11 }
  0x23   :  { %p4492_p0 = pnand %p4491_p13, %p4485_p10 }
  0x25   :  { %4495 = shalt.err (!%p4492_p0)
}
  0x26   :  { %83 = dma.hbm_to_vmem [thread:$0]  %s4810_s6, 16, %s81_s24, [#allocation11]  }
  0x27   :  { %s4504_s30 = scalar_lea.vmem %s25_s1, 704  ;;  %p4509_p2 = scmp.lt.s32.totalorder %s25_s1, %s25_s1 }
  0x28   :  { %p4505_p1 = scmp.ne.s32.totalorder %s25_s1, %s4504_s30  ;;  %p4510_p3 = scmp.lt.s32.totalorder %s4504_s30, %s4504_s30 }
  0x2a   :  { %p4511_p4 = por %p4510_p3, %p4509_p2 }
  0x2c   :  { %p4512_p5 = pnand %p4511_p4, %p4505_p1 }
  0x2e   :  { %4515 = shalt.err (!%p4512_p5)
}
  0x2f   :  { %27 = dma.hbm_to_vmem [thread:$0]  %s4804_s0, 704, %s25_s1, [#allocation3]  }
  0x30   :  { %s4592_s11 = smov [#allocation6]   ;;  %s4593_s13 = smov [#allocation9]  }
  0x31   :  { %s46_s12 = sshll.u32 %s4592_s11, 4  ;;  %s68_s14 = sshll.u32 %s4593_s13, 4  ;;  %s47_s12 = int_to_ptr.vmem [resolvable:$true] %s46_s12  ;;  %s69_s14 = int_to_ptr.vmem [resolvable:$true] %s68_s14 }
  0x32   :  { %s4524_s15 = scalar_lea.vmem %s47_s12, 64  ;;  %p4529_p7 = scmp.lt.s32.totalorder %s47_s12, %s47_s12 }
  0x33   :  { %p4525_p6 = scmp.ne.s32.totalorder %s47_s12, %s4524_s15  ;;  %p4530_p8 = scmp.lt.s32.totalorder %s4524_s15, %s4524_s15 }
  0x35   :  { %p4531_p9 = por %p4530_p8, %p4529_p7 }
  0x37   :  { %p4532_p10 = pnand %p4531_p9, %p4525_p6 }
  0x39   :  { %4535 = shalt.err (!%p4532_p10)
}
  0x3a   :  { %49 = dma.hbm_to_vmem [thread:$0]  %s4806_s2, 64, %s47_s12, [#allocation5]  }
  0x3b   :  { %s4544_s17 = scalar_lea.vmem %s69_s14, 16  ;;  %s4548_s0 = scalar_lea.vmem %s69_s14, 32 }
  0x3c   :  { %p4545_p11 = scmp.ne.s32.totalorder %s69_s14, %s4544_s17  ;;  %p4549_p12 = scmp.lt.s32.totalorder %s69_s14, %s69_s14 }
  0x3d   :  { %p4550_p13 = scmp.lt.s32.totalorder %s4548_s0, %s4544_s17 }
  0x3f   :  { %p4551_p0 = por %p4550_p13, %p4549_p12 }
  0x41   :  { %p4552_p1 = pnand %p4551_p0, %p4545_p11 }
  0x43   :  { %4555 = shalt.err (!%p4552_p1)
}
  0x44   :  { %71 = dma.hbm_to_vmem [thread:$0]  %s4808_s4, 16, %s69_s14, [#allocation8]  }
  0x45   :  { %s4594_s20 = smov [#allocation12]  }
  0x46   :  { %s92_s21 = sshll.u32 %s4594_s20, 4  ;;  %s93_s21 = int_to_ptr.vmem [resolvable:$true] %s92_s21 }
  0x47   :  { %s4564_s22 = scalar_lea.vmem %s93_s21, 16  ;;  %s4568_s23 = scalar_lea.vmem %s93_s21, 32 }
  0x48   :  { %p4565_p2 = scmp.ne.s32.totalorder %s93_s21, %s4564_s22  ;;  %p4569_p3 = scmp.lt.s32.totalorder %s93_s21, %s93_s21 }
  0x49   :  { %p4570_p4 = scmp.lt.s32.totalorder %s4568_s23, %s4564_s22 }
  0x4b   :  { %p4571_p5 = por %p4570_p4, %p4569_p3 }
  0x4d   :  { %p4572_p6 = pnand %p4571_p5, %p4565_p2 }
  0x4f   :  { %4575 = shalt.err (!%p4572_p6)
}
  0x50   :  { %95 = dma.hbm_to_vmem [thread:$0]  %s4812_s8, 16, %s93_s21, [#allocation11]  }
  0x51   :  { %4576 = dma.done.wait [#allocation3], 704  }
  0x52   :  { %4577 = vsyncadd [#allocation3], 4294966592 }
  0x53   :  { %4578 = dma.done.wait [#allocation5], 45120  }
  0x54   :  { %4579 = vsyncadd [#allocation5], 4294922176 }
  0x55   :  { %4580 = dma.done.wait [#allocation8], 4112  }
  0x56   :  { %4581 = vsyncadd [#allocation8], 4294963184 }
  0x57   :  { %4582 = dma.done.wait [#allocation11], 32  }
  0x58   :  { %4583 = vsyncadd [#allocation11], 4294967264  ;;  %v3850_v0 = vld [vmem:[#allocation4 + $0xe4] ss:$16 sps:$4 sm:$0xff]   ;;  %v3854_v2 = vld [vmem:[#allocation4 + $0xe0] ss:$16 sps:$4 sm:$0xff]  }
  0x59   :  { %v3852_v1 = vld [vmem:[#allocation4 + $0x2e4] ss:$16 sps:$4 sm:$0xff]   ;;  %2297 = vmatprep.subr.bf16.mxu0 %v3850_v0  ;;  %v3855_v3 = vld [vmem:[#allocation4 + $0x2e0] ss:$16 sps:$4 sm:$0xff]   ;;  %vm4597_vm0 = vmmov 0   ;;  %vm3278_vm1 = vcmask 261120  }
  0x5a   :  { %2338 = vmatprep.subr.bf16.mxu1 %v3852_v1  ;;  %v3856_v4 = vld [vmem:[#allocation4 + $0xc4] ss:$16 sps:$4 sm:$0xff]   ;;  %2298 = vmatpush1.bf16.msra.mxu0 %v3854_v2  ;;  %v3860_v6 = vld [vmem:[#allocation4 + $0xc0] ss:$16 sps:$4 sm:$0xff]   ;;  %vm3322_vm2 = vcmask 15360  }
  0x5b   :  { %2339 = vmatpush1.bf16.msra.mxu1 %v3855_v3  ;;  %v3858_v5 = vld [vmem:[#allocation4 + $0x2c4] ss:$16 sps:$4 sm:$0xff]   ;;  %2299 = vmatprep.subr.bf16.mxu0 %v3856_v4  ;;  %v3861_v7 = vld [vmem:[#allocation4 + $0x2c0] ss:$16 sps:$4 sm:$0xff]  }
  0x5c   :  { %2340 = vmatprep.subr.bf16.mxu1 %v3858_v5  ;;  %v3862_v8 = vld [vmem:[#allocation4 + $0xa4] ss:$16 sps:$4 sm:$0xff]   ;;  %v3866_v10 = vld [vmem:[#allocation4 + $0xa0] ss:$16 sps:$4 sm:$0xff]  }
  0x5d   :  { %v3864_v9 = vld [vmem:[#allocation4 + $0x2a4] ss:$16 sps:$4 sm:$0xff]   ;;  %v3867_v11 = vld [vmem:[#allocation4 + $0x2a0] ss:$16 sps:$4 sm:$0xff]  }
  0x5e   :  { %2300 = vmatpush1.bf16.msra.mxu0 %v3860_v6  ;;  %v3868_v12 = vld [vmem:[#allocation4 + $0x84] ss:$16 sps:$4 sm:$0xff]   ;;  %v3872_v14 = vld [vmem:[#allocation4 + $0x80] ss:$16 sps:$4 sm:$0xff]  }
  0x5f   :  { %2341 = vmatpush1.bf16.msra.mxu1 %v3861_v7  ;;  %2301 = vmatprep.subr.bf16.mxu0 %v3862_v8  ;;  %v3870_v13 = vld [vmem:[#allocation4 + $0x284] ss:$16 sps:$4 sm:$0xff]   ;;  %v3873_v15 = vld [vmem:[#allocation4 + $0x280] ss:$16 sps:$4 sm:$0xff]  }
  0x60   :  { %2342 = vmatprep.subr.bf16.mxu1 %v3864_v9  ;;  %v3874_v16 = vld [vmem:[#allocation4 + $0x64] ss:$16 sps:$4 sm:$0xff]   ;;  %v3878_v18 = vld [vmem:[#allocation4 + $0x60] ss:$16 sps:$4 sm:$0xff]  }
  0x61   :  { %v3876_v17 = vld [vmem:[#allocation4 + $0x264] ss:$16 sps:$4 sm:$0xff]   ;;  %v3879_v19 = vld [vmem:[#allocation4 + $0x260] ss:$16 sps:$4 sm:$0xff]  }
  0x62   :  { %2302 = vmatpush1.bf16.msra.mxu0 %v3866_v10  ;;  %v3880_v20 = vld [vmem:[#allocation4 + $0x44] ss:$16 sps:$4 sm:$0xff]   ;;  %v3884_v22 = vld [vmem:[#allocation4 + $0x40] ss:$16 sps:$4 sm:$0xff]  }
  0x63   :  { %2343 = vmatpush1.bf16.msra.mxu1 %v3867_v11  ;;  %2303 = vmatprep.subr.bf16.mxu0 %v3868_v12  ;;  %v3882_v21 = vld [vmem:[#allocation4 + $0x244] ss:$16 sps:$4 sm:$0xff]   ;;  %v3885_v23 = vld [vmem:[#allocation4 + $0x240] ss:$16 sps:$4 sm:$0xff]  }
  0x64   :  { %2344 = vmatprep.subr.bf16.mxu1 %v3870_v13  ;;  %v3886_v24 = vld [vmem:[#allocation4 + $0x24] ss:$16 sps:$4 sm:$0xff]   ;;  %v3890_v26 = vld [vmem:[#allocation4 + $0x20] ss:$16 sps:$4 sm:$0xff]  }
  0x65   :  { %v3888_v25 = vld [vmem:[#allocation4 + $0x224] ss:$16 sps:$4 sm:$0xff]   ;;  %v3891_v27 = vld [vmem:[#allocation4 + $0x220] ss:$16 sps:$4 sm:$0xff]  }
  0x66   :  { %2304 = vmatpush1.bf16.msra.mxu0 %v3872_v14  ;;  %v3892_v28 = vld [vmem:[#allocation4 + $0x4] ss:$16 sps:$4 sm:$0xff]   ;;  %v3896_v30 = vld [vmem:[#allocation4] ss:$16 sps:$4 sm:$0xff]  }
  0x67   :  { %2345 = vmatpush1.bf16.msra.mxu1 %v3873_v15  ;;  %2305 = vmatprep.subr.bf16.mxu0 %v3874_v16  ;;  %v3894_v29 = vld [vmem:[#allocation4 + $0x204] ss:$16 sps:$4 sm:$0xff]   ;;  %v3897_v31 = vld [vmem:[#allocation4 + $0x200] ss:$16 sps:$4 sm:$0xff]  }
  0x68   :  { %2346 = vmatprep.subr.bf16.mxu1 %v3876_v17  ;;  %v3898_v32 = vld [vmem:[#allocation4 + $0x1e4] ss:$16 sps:$4 sm:$0xff]   ;;  %v3902_v34 = vld [vmem:[#allocation4 + $0x1e0] ss:$16 sps:$4 sm:$0xff]  }
  0x69   :  { %v3900_v33 = vld [vmem:[#allocation4 + $0x3e4] ss:$16 sps:$4 sm:$0xff]   ;;  %v3903_v35 = vld [vmem:[#allocation4 + $0x3e0] ss:$16 sps:$4 sm:$0xff]  }
  0x6a   :  { %2306 = vmatpush1.bf16.msra.mxu0 %v3878_v18  ;;  %v3904_v36 = vld [vmem:[#allocation4 + $0x1c4] ss:$16 sps:$4 sm:$0xff]   ;;  %v3908_v38 = vld [vmem:[#allocation4 + $0x1c0] ss:$16 sps:$4 sm:$0xff]  }
  0x6b   :  { %2347 = vmatpush1.bf16.msra.mxu1 %v3879_v19  ;;  %2307 = vmatprep.subr.bf16.mxu0 %v3880_v20  ;;  %v3906_v37 = vld [vmem:[#allocation4 + $0x3c4] ss:$16 sps:$4 sm:$0xff]   ;;  %v3909_v39 = vld [vmem:[#allocation4 + $0x3c0] ss:$16 sps:$4 sm:$0xff]  }
  0x6c   :  { %2348 = vmatprep.subr.bf16.mxu1 %v3882_v21  ;;  %v3910_v40 = vld [vmem:[#allocation4 + $0x1a4] ss:$16 sps:$4 sm:$0xff]   ;;  %v3914_v42 = vld [vmem:[#allocation4 + $0x1a0] ss:$16 sps:$4 sm:$0xff]  }
  0x6d   :  { %v3912_v41 = vld [vmem:[#allocation4 + $0x3a4] ss:$16 sps:$4 sm:$0xff]   ;;  %v3915_v43 = vld [vmem:[#allocation4 + $0x3a0] ss:$16 sps:$4 sm:$0xff]  }
  0x6e   :  { %2308 = vmatpush1.bf16.msra.mxu0 %v3884_v22  ;;  %v3916_v44 = vld [vmem:[#allocation4 + $0x184] ss:$16 sps:$4 sm:$0xff]   ;;  %v119_v48 = vld [vmem:[#allocation2 + $0x8] sm:$0xff] }
  0x6f   :  { %2349 = vmatpush1.bf16.msra.mxu1 %v3885_v23  ;;  %2309 = vmatprep.subr.bf16.mxu0 %v3886_v24  ;;  %v3918_v45 = vld [vmem:[#allocation4 + $0x384] ss:$16 sps:$4 sm:$0xff]   ;;  %v3920_v49 = vld [vmem:[#allocation4 + $0x180] ss:$16 sps:$4 sm:$0xff]   ;;  %v4671_v51 = vcombine.high %v119_v48, %v119_v48  ;;  %v4677_v7 = vcombine.low %v119_v48, %v119_v48 }
  0x70   :  { %2350 = vmatprep.subr.bf16.mxu1 %v3888_v25  ;;  %v118_v46 = vld [vmem:[#allocation2] sm:$0xff]  ;;  %v3921_v50 = vld [vmem:[#allocation4 + $0x380] ss:$16 sps:$4 sm:$0xff]  }
  0x71   :  { %v4669_v47 = vcombine.high %v118_v46, %v118_v46  ;;  %v3922_v52 = vld [vmem:[#allocation4 + $0x164] ss:$16 sps:$4 sm:$0xff]   ;;  %2370 = vmatprep.mubr.bf16.mxu1 %v4671_v51  ;;  %v3926_v54 = vld [vmem:[#allocation4 + $0x160] ss:$16 sps:$4 sm:$0xff]   ;;  %v4675_v6 = vcombine.low %v118_v46, %v118_v46 }
  0x72   :  { %2310 = vmatpush1.bf16.msra.mxu0 %v3890_v26  ;;  %v3924_v53 = vld [vmem:[#allocation4 + $0x364] ss:$16 sps:$4 sm:$0xff]   ;;  %v3927_v55 = vld [vmem:[#allocation4 + $0x360] ss:$16 sps:$4 sm:$0xff]  }
  0x73   :  { %2351 = vmatpush1.bf16.msra.mxu1 %v3891_v27  ;;  %2311 = vmatprep.subr.bf16.mxu0 %v3892_v28  ;;  %v3928_v56 = vld [vmem:[#allocation4 + $0x144] ss:$16 sps:$4 sm:$0xff]   ;;  %v3932_v58 = vld [vmem:[#allocation4 + $0x140] ss:$16 sps:$4 sm:$0xff]  }
  0x74   :  { %2352 = vmatprep.subr.bf16.mxu1 %v3894_v29  ;;  %2329 = vmatprep.mubr.bf16.mxu0 %v4669_v47  ;;  %v3930_v57 = vld [vmem:[#allocation4 + $0x344] ss:$16 sps:$4 sm:$0xff]   ;;  %v3933_v59 = vld [vmem:[#allocation4 + $0x340] ss:$16 sps:$4 sm:$0xff]  }
  0x75   :  { %v3934_v60 = vld [vmem:[#allocation4 + $0x124] ss:$16 sps:$4 sm:$0xff]   ;;  %v3938_v62 = vld [vmem:[#allocation4 + $0x120] ss:$16 sps:$4 sm:$0xff]  }
  0x76   :  { %2312 = vmatpush1.bf16.msra.mxu0 %v3896_v30  ;;  %v3936_v61 = vld [vmem:[#allocation4 + $0x324] ss:$16 sps:$4 sm:$0xff]   ;;  %v3939_v63 = vld [vmem:[#allocation4 + $0x320] ss:$16 sps:$4 sm:$0xff]  }
  0x77   :  { %2353 = vmatpush1.bf16.msra.mxu1 %v3897_v31  ;;  %2313 = vmatprep.subr.bf16.mxu0 %v3898_v32  ;;  %v3940_v0 = vld [vmem:[#allocation4 + $0x104] ss:$16 sps:$4 sm:$0xff]   ;;  %v3944_v2 = vld [vmem:[#allocation4 + $0x100] ss:$16 sps:$4 sm:$0xff]  }
  0x78   :  { %2354 = vmatprep.subr.bf16.mxu1 %v3900_v33  ;;  %v3942_v1 = vld [vmem:[#allocation4 + $0x304] ss:$16 sps:$4 sm:$0xff]   ;;  %v3945_v3 = vld [vmem:[#allocation4 + $0x300] ss:$16 sps:$4 sm:$0xff]  }
  0x79   :  { %v3952_v4 = vld [vmem:[#allocation4 + $0x4e4] ss:$16 sps:$4 sm:$0xff]   ;;  %v3950_v8 = vld [vmem:[#allocation4 + $0x4e0] ss:$16 sps:$4 sm:$0xff]  }
  0x7a   :  { %2314 = vmatpush2.bf16.msra.mxu0 %v3902_v34  ;;  %v3955_v5 = vld [vmem:[#allocation4 + $0x6e4] ss:$16 sps:$4 sm:$0xff]   ;;  %v3953_v9 = vld [vmem:[#allocation4 + $0x6e0] ss:$16 sps:$4 sm:$0xff]  }
  0x7b   :  { %2355 = vmatpush2.bf16.msra.mxu1 %v3903_v35  ;;  %2315 = vmatprep.subr.bf16.mxu0 %v3904_v36  ;;  %v3958_v10 = vld [vmem:[#allocation4 + $0x4c4] ss:$16 sps:$4 sm:$0xff]   ;;  %v3956_v12 = vld [vmem:[#allocation4 + $0x4c0] ss:$16 sps:$4 sm:$0xff]  }
  0x7c   :  { %2356 = vmatprep.subr.bf16.mxu1 %v3906_v37  ;;  %v3961_v11 = vld [vmem:[#allocation4 + $0x6c4] ss:$16 sps:$4 sm:$0xff]   ;;  %v3959_v13 = vld [vmem:[#allocation4 + $0x6c0] ss:$16 sps:$4 sm:$0xff]  }
  0x7d   :  { %v3964_v14 = vld [vmem:[#allocation4 + $0x4a4] ss:$16 sps:$4 sm:$0xff]   ;;  %v3962_v16 = vld [vmem:[#allocation4 + $0x4a0] ss:$16 sps:$4 sm:$0xff]  }
  0x7e   :  { %2316 = vmatpush2.bf16.msra.mxu0 %v3908_v38  ;;  %v3967_v15 = vld [vmem:[#allocation4 + $0x6a4] ss:$16 sps:$4 sm:$0xff]   ;;  %v3965_v17 = vld [vmem:[#allocation4 + $0x6a0] ss:$16 sps:$4 sm:$0xff]  }
  0x7f   :  { %2357 = vmatpush2.bf16.msra.mxu1 %v3909_v39  ;;  %2317 = vmatprep.subr.bf16.mxu0 %v3910_v40  ;;  %v3970_v18 = vld [vmem:[#allocation4 + $0x484] ss:$16 sps:$4 sm:$0xff]   ;;  %v3968_v20 = vld [vmem:[#allocation4 + $0x480] ss:$16 sps:$4 sm:$0xff]  }
  0x80   :  { %2358 = vmatprep.subr.bf16.mxu1 %v3912_v41  ;;  %v3973_v19 = vld [vmem:[#allocation4 + $0x684] ss:$16 sps:$4 sm:$0xff]   ;;  %v3971_v21 = vld [vmem:[#allocation4 + $0x680] ss:$16 sps:$4 sm:$0xff]  }
  0x81   :  { %v3976_v22 = vld [vmem:[#allocation4 + $0x464] ss:$16 sps:$4 sm:$0xff]   ;;  %v3974_v24 = vld [vmem:[#allocation4 + $0x460] ss:$16 sps:$4 sm:$0xff]  }
  0x82   :  { %2318 = vmatpush2.bf16.msra.mxu0 %v3914_v42  ;;  %v3979_v23 = vld [vmem:[#allocation4 + $0x664] ss:$16 sps:$4 sm:$0xff]   ;;  %v3977_v25 = vld [vmem:[#allocation4 + $0x660] ss:$16 sps:$4 sm:$0xff]  }
  0x83   :  { %2359 = vmatpush2.bf16.msra.mxu1 %v3915_v43  ;;  %2319 = vmatprep.subr.bf16.mxu0 %v3916_v44  ;;  %v3982_v26 = vld [vmem:[#allocation4 + $0x444] ss:$16 sps:$4 sm:$0xff]   ;;  %v3980_v28 = vld [vmem:[#allocation4 + $0x440] ss:$16 sps:$4 sm:$0xff]  }
  0x84   :  { %2360 = vmatprep.subr.bf16.mxu1 %v3918_v45  ;;  %v3985_v27 = vld [vmem:[#allocation4 + $0x644] ss:$16 sps:$4 sm:$0xff]   ;;  %v3983_v29 = vld [vmem:[#allocation4 + $0x640] ss:$16 sps:$4 sm:$0xff]  }
  0x85   :  { %v3988_v30 = vld [vmem:[#allocation4 + $0x424] ss:$16 sps:$4 sm:$0xff]   ;;  %v4683_v33 = vld [vmem:[#allocation2 + $0x18] sm:$0xff] }
  0x86   :  { %2320 = vmatpush2.bf16.msra.mxu0 %v3920_v49  ;;  %v3991_v31 = vld [vmem:[#allocation4 + $0x624] ss:$16 sps:$4 sm:$0xff]   ;;  %v3986_v34 = vld [vmem:[#allocation4 + $0x420] ss:$16 sps:$4 sm:$0xff]   ;;  %v4691_v37 = vcombine.high %v4683_v33, %v4683_v33 }
  0x87   :  { %2361 = vmatpush2.bf16.msra.mxu1 %v3921_v50  ;;  %2321 = vmatprep.subr.bf16.mxu0 %v3922_v52  ;;  %v4681_v32 = vld [vmem:[#allocation2 + $0x10] sm:$0xff]  ;;  %v3989_v35 = vld [vmem:[#allocation4 + $0x620] ss:$16 sps:$4 sm:$0xff]  }
  0x88   :  { %2362 = vmatprep.subr.bf16.mxu1 %v3924_v53  ;;  %v4687_v36 = vcombine.high %v4681_v32, %v4681_v32  ;;  %v3994_v38 = vld [vmem:[#allocation4 + $0x404] ss:$16 sps:$4 sm:$0xff]   ;;  %v3992_v40 = vld [vmem:[#allocation4 + $0x400] ss:$16 sps:$4 sm:$0xff]  }
  0x89   :  { %v3997_v39 = vld [vmem:[#allocation4 + $0x604] ss:$16 sps:$4 sm:$0xff]   ;;  %v3995_v41 = vld [vmem:[#allocation4 + $0x600] ss:$16 sps:$4 sm:$0xff]  }
  0x8a   :  { %2322 = vmatpush2.bf16.msra.mxu0 %v3926_v54  ;;  %v4000_v42 = vld [vmem:[#allocation4 + $0x5e4] ss:$16 sps:$4 sm:$0xff]   ;;  %v3998_v44 = vld [vmem:[#allocation4 + $0x5e0] ss:$16 sps:$4 sm:$0xff]  }
  0x8b   :  { %2363 = vmatpush2.bf16.msra.mxu1 %v3927_v55  ;;  %2323 = vmatprep.subr.bf16.mxu0 %v3928_v56  ;;  %v4003_v43 = vld [vmem:[#allocation4 + $0x7e4] ss:$16 sps:$4 sm:$0xff]   ;;  %v4001_v45 = vld [vmem:[#allocation4 + $0x7e0] ss:$16 sps:$4 sm:$0xff]  }
  0x8c   :  { %2364 = vmatprep.subr.bf16.mxu1 %v3930_v57  ;;  %v4006_v46 = vld [vmem:[#allocation4 + $0x5c4] ss:$16 sps:$4 sm:$0xff]   ;;  %v4004_v49 = vld [vmem:[#allocation4 + $0x5c0] ss:$16 sps:$4 sm:$0xff]  }
  0x8d   :  { %v4009_v48 = vld [vmem:[#allocation4 + $0x7c4] ss:$16 sps:$4 sm:$0xff]   ;;  %v4007_v50 = vld [vmem:[#allocation4 + $0x7c0] ss:$16 sps:$4 sm:$0xff]  }
  0x8e   :  { %2324 = vmatpush2.bf16.msra.mxu0 %v3932_v58  ;;  %v4012_v52 = vld [vmem:[#allocation4 + $0x5a4] ss:$16 sps:$4 sm:$0xff]   ;;  %v4010_v54 = vld [vmem:[#allocation4 + $0x5a0] ss:$16 sps:$4 sm:$0xff]  }
  0x8f   :  { %2365 = vmatpush2.bf16.msra.mxu1 %v3933_v59  ;;  %2325 = vmatprep.subr.bf16.mxu0 %v3934_v60  ;;  %v4015_v53 = vld [vmem:[#allocation4 + $0x7a4] ss:$16 sps:$4 sm:$0xff]   ;;  %v4013_v55 = vld [vmem:[#allocation4 + $0x7a0] ss:$16 sps:$4 sm:$0xff]  }
  0x90   :  { %2366 = vmatprep.subr.bf16.mxu1 %v3936_v61  ;;  %v4018_v56 = vld [vmem:[#allocation4 + $0x584] ss:$16 sps:$4 sm:$0xff]   ;;  %v4016_v58 = vld [vmem:[#allocation4 + $0x580] ss:$16 sps:$4 sm:$0xff]  }
  0x91   :  { %v4021_v57 = vld [vmem:[#allocation4 + $0x784] ss:$16 sps:$4 sm:$0xff]   ;;  %v4019_v59 = vld [vmem:[#allocation4 + $0x780] ss:$16 sps:$4 sm:$0xff]  }
  0x92   :  { %2326 = vmatpush2.bf16.msra.mxu0 %v3938_v62  ;;  %v4024_v60 = vld [vmem:[#allocation4 + $0x564] ss:$16 sps:$4 sm:$0xff]   ;;  %v4022_v62 = vld [vmem:[#allocation4 + $0x560] ss:$16 sps:$4 sm:$0xff]  }
  0x93   :  { %2367 = vmatpush2.bf16.msra.mxu1 %v3939_v63  ;;  %2327 = vmatprep.subr.bf16.mxu0 %v3940_v0  ;;  %v4027_v61 = vld [vmem:[#allocation4 + $0x764] ss:$16 sps:$4 sm:$0xff]   ;;  %v4025_v63 = vld [vmem:[#allocation4 + $0x760] ss:$16 sps:$4 sm:$0xff]  }
  0x94   :  { %2368 = vmatprep.subr.bf16.mxu1 %v3942_v1  ;;  %v4030_v0 = vld [vmem:[#allocation4 + $0x544] ss:$16 sps:$4 sm:$0xff]  }
  0x95   :  { %v4033_v1 = vld [vmem:[#allocation4 + $0x744] ss:$16 sps:$4 sm:$0xff]  }
  0x96   :  { %2328 = vmatpush2.bf16.msra.mxu0 %v3944_v2  ;;  %v4028_v2 = vld [vmem:[#allocation4 + $0x540] ss:$16 sps:$4 sm:$0xff]  }
  0x97   :  { %2369 = vmatpush2.bf16.msra.mxu1 %v3945_v3  ;;  %2379 = vmatprep.subr.bf16.mxu0 %v3952_v4  ;;  %v4031_v3 = vld [vmem:[#allocation4 + $0x740] ss:$16 sps:$4 sm:$0xff]   ;;  %v4036_v4 = vld [vmem:[#allocation4 + $0x524] ss:$16 sps:$4 sm:$0xff]  }
  0x98   :  { %2420 = vmatprep.subr.bf16.mxu1 %v3955_v5  ;;  %v4039_v5 = vld [vmem:[#allocation4 + $0x724] ss:$16 sps:$4 sm:$0xff]  }
  0x99   :  { %2330 = vmatmul.mubr.bf16.vlgmr.msra.gmra.mxu0 %v4675_v6 }
  0x9a   :  { %2371 = vmatmul.mubr.bf16.vlgmr.msra.gmra.mxu1 %v4677_v7  ;;  %2380 = vmatpush1.bf16.msra.mxu0 %v3950_v8  ;;  %v4034_v8 = vld [vmem:[#allocation4 + $0x520] ss:$16 sps:$4 sm:$0xff]  }
  0x9b   :  { %2421 = vmatpush1.bf16.msra.mxu1 %v3953_v9  ;;  %2381 = vmatprep.subr.bf16.mxu0 %v3958_v10  ;;  %v4037_v9 = vld [vmem:[#allocation4 + $0x720] ss:$16 sps:$4 sm:$0xff]   ;;  %v4042_v10 = vld [vmem:[#allocation4 + $0x504] ss:$16 sps:$4 sm:$0xff]  }
  0x9c   :  { %2422 = vmatprep.subr.bf16.mxu1 %v3961_v11  ;;  %2411 = vmatprep.mubr.bf16.mxu0 %v4687_v36  ;;  %v4045_v11 = vld [vmem:[#allocation4 + $0x704] ss:$16 sps:$4 sm:$0xff]  }
  0x9d   :  { %2452 = vmatprep.mubr.bf16.mxu1 %v4691_v37 }
  0x9e   :  { %2382 = vmatpush1.bf16.msra.mxu0 %v3956_v12  ;;  %v4040_v12 = vld [vmem:[#allocation4 + $0x500] ss:$16 sps:$4 sm:$0xff]  }
  0x9f   :  { %2423 = vmatpush1.bf16.msra.mxu1 %v3959_v13  ;;  %2383 = vmatprep.subr.bf16.mxu0 %v3964_v14  ;;  %v4043_v13 = vld [vmem:[#allocation4 + $0x700] ss:$16 sps:$4 sm:$0xff]   ;;  %v4052_v14 = vld [vmem:[#allocation4 + $0x8e4] ss:$16 sps:$4 sm:$0xff]  }
  0xa0   :  { %2424 = vmatprep.subr.bf16.mxu1 %v3967_v15  ;;  %v4055_v15 = vld [vmem:[#allocation4 + $0xae4] ss:$16 sps:$4 sm:$0xff]  }
  0xa2   :  { %2384 = vmatpush1.bf16.msra.mxu0 %v3962_v16  ;;  %v4697_v16 = vcombine.low %v4681_v32, %v4681_v32  ;;  %v4073_v32 = vld [vmem:[#allocation4 + $0xa84] ss:$16 sps:$4 sm:$0xff]  }
  0xa3   :  { %2425 = vmatpush1.bf16.msra.mxu1 %v3965_v17  ;;  %2385 = vmatprep.subr.bf16.mxu0 %v3970_v18  ;;  %v4701_v17 = vcombine.low %v4683_v33, %v4683_v33  ;;  %v4050_v18 = vld [vmem:[#allocation4 + $0x8e0] ss:$16 sps:$4 sm:$0xff]  }
  0xa4   :  { %2426 = vmatprep.subr.bf16.mxu1 %v3973_v19  ;;  %v4053_v19 = vld [vmem:[#allocation4 + $0xae0] ss:$16 sps:$4 sm:$0xff]  }
  0xa5   :  { %v4068_v33 = vld [vmem:[#allocation4 + $0x880] ss:$16 sps:$4 sm:$0xff]  }
  0xa6   :  { %2386 = vmatpush1.bf16.msra.mxu0 %v3968_v20  ;;  %v4058_v20 = vld [vmem:[#allocation4 + $0x8c4] ss:$16 sps:$4 sm:$0xff]  }
  0xa7   :  { %2427 = vmatpush1.bf16.msra.mxu1 %v3971_v21  ;;  %2387 = vmatprep.subr.bf16.mxu0 %v3976_v22  ;;  %v4061_v21 = vld [vmem:[#allocation4 + $0xac4] ss:$16 sps:$4 sm:$0xff]  }
  0xa8   :  { %2428 = vmatprep.subr.bf16.mxu1 %v3979_v23  ;;  %v4703_v22 = vld [vmem:[#allocation2 + $0x20] sm:$0xff]  ;;  %v4056_v23 = vld [vmem:[#allocation4 + $0x8c0] ss:$16 sps:$4 sm:$0xff]  }
  0xaa   :  { %2388 = vmatpush1.bf16.msra.mxu0 %v3974_v24  ;;  %v4709_v24 = vcombine.high %v4703_v22, %v4703_v22 }
  0xab   :  { %2429 = vmatpush1.bf16.msra.mxu1 %v3977_v25  ;;  %2389 = vmatprep.subr.bf16.mxu0 %v3982_v26  ;;  %v4059_v25 = vld [vmem:[#allocation4 + $0xac0] ss:$16 sps:$4 sm:$0xff]   ;;  %v4064_v26 = vld [vmem:[#allocation4 + $0x8a4] ss:$16 sps:$4 sm:$0xff]  }
  0xac   :  { %2430 = vmatprep.subr.bf16.mxu1 %v3985_v27  ;;  %v4067_v27 = vld [vmem:[#allocation4 + $0xaa4] ss:$16 sps:$4 sm:$0xff]  }
  0xae   :  { %2390 = vmatpush1.bf16.msra.mxu0 %v3980_v28  ;;  %v4595_v28 = vmov 0  }
  0xaf   :  { %2431 = vmatpush1.bf16.msra.mxu1 %v3983_v29  ;;  %2391 = vmatprep.subr.bf16.mxu0 %v3988_v30  ;;  %v4062_v29 = vld [vmem:[#allocation4 + $0x8a0] ss:$16 sps:$4 sm:$0xff]  }
  0xb0   :  { %2432 = vmatprep.subr.bf16.mxu1 %v3991_v31  ;;  %v4065_v30 = vld [vmem:[#allocation4 + $0xaa0] ss:$16 sps:$4 sm:$0xff]   ;;  %v4070_v31 = vld [vmem:[#allocation4 + $0x884] ss:$16 sps:$4 sm:$0xff]  }
  0xb2   :  { %2392 = vmatpush1.bf16.msra.mxu0 %v3986_v34  ;;  %v4071_v34 = vld [vmem:[#allocation4 + $0xa80] ss:$16 sps:$4 sm:$0xff]  }
  0xb3   :  { %2433 = vmatpush1.bf16.msra.mxu1 %v3989_v35  ;;  %2393 = vmatprep.subr.bf16.mxu0 %v3994_v38  ;;  %v4076_v35 = vld [vmem:[#allocation4 + $0x864] ss:$16 sps:$4 sm:$0xff]  }
  0xb4   :  { %2434 = vmatprep.subr.bf16.mxu1 %v3997_v39  ;;  %v4079_v38 = vld [vmem:[#allocation4 + $0xa64] ss:$16 sps:$4 sm:$0xff]   ;;  %v4074_v39 = vld [vmem:[#allocation4 + $0x860] ss:$16 sps:$4 sm:$0xff]  }
  0xb6   :  { %2394 = vmatpush1.bf16.msra.mxu0 %v3992_v40  ;;  %v4077_v40 = vld [vmem:[#allocation4 + $0xa60] ss:$16 sps:$4 sm:$0xff]  }
  0xb7   :  { %2435 = vmatpush1.bf16.msra.mxu1 %v3995_v41  ;;  %2395 = vmatprep.subr.bf16.mxu0 %v4000_v42  ;;  %v4082_v41 = vld [vmem:[#allocation4 + $0x844] ss:$16 sps:$4 sm:$0xff]  }
  0xb8   :  { %2436 = vmatprep.subr.bf16.mxu1 %v4003_v43  ;;  %v4085_v42 = vld [vmem:[#allocation4 + $0xa44] ss:$16 sps:$4 sm:$0xff]   ;;  %v4080_v43 = vld [vmem:[#allocation4 + $0x840] ss:$16 sps:$4 sm:$0xff]  }
  0xba   :  { %2396 = vmatpush2.bf16.msra.mxu0 %v3998_v44  ;;  %v4083_v44 = vld [vmem:[#allocation4 + $0xa40] ss:$16 sps:$4 sm:$0xff]  }
  0xbb   :  { %2437 = vmatpush2.bf16.msra.mxu1 %v4001_v45  ;;  %2397 = vmatprep.subr.bf16.mxu0 %v4006_v46  ;;  %v4088_v45 = vld [vmem:[#allocation4 + $0x824] ss:$16 sps:$4 sm:$0xff]  }
  0xbc   :  { %2438 = vmatprep.subr.bf16.mxu1 %v4009_v48  ;;  %v4091_v46 = vld [vmem:[#allocation4 + $0xa24] ss:$16 sps:$4 sm:$0xff]   ;;  %v4086_v48 = vld [vmem:[#allocation4 + $0x820] ss:$16 sps:$4 sm:$0xff]  }
  0xbe   :  { %2398 = vmatpush2.bf16.msra.mxu0 %v4004_v49  ;;  %v4089_v49 = vld [vmem:[#allocation4 + $0xa20] ss:$16 sps:$4 sm:$0xff]  }
  0xbf   :  { %2439 = vmatpush2.bf16.msra.mxu1 %v4007_v50  ;;  %2399 = vmatprep.subr.bf16.mxu0 %v4012_v52  ;;  %v4094_v50 = vld [vmem:[#allocation4 + $0x804] ss:$16 sps:$4 sm:$0xff]  }
  0xc0   :  { %2440 = vmatprep.subr.bf16.mxu1 %v4015_v53  ;;  %v4097_v52 = vld [vmem:[#allocation4 + $0xa04] ss:$16 sps:$4 sm:$0xff]   ;;  %v4092_v53 = vld [vmem:[#allocation4 + $0x800] ss:$16 sps:$4 sm:$0xff]  }
  0xc2   :  { %2400 = vmatpush2.bf16.msra.mxu0 %v4010_v54  ;;  %v4095_v54 = vld [vmem:[#allocation4 + $0xa00] ss:$16 sps:$4 sm:$0xff]  }
  0xc3   :  { %2441 = vmatpush2.bf16.msra.mxu1 %v4013_v55  ;;  %2401 = vmatprep.subr.bf16.mxu0 %v4018_v56  ;;  %v4100_v55 = vld [vmem:[#allocation4 + $0x9e4] ss:$16 sps:$4 sm:$0xff]   ;;  %v4104_v56 = vld [vmem:[#allocation4 + $0xec] ss:$16 sps:$4 sm:$0xff]  }
  0xc4   :  { %2442 = vmatprep.subr.bf16.mxu1 %v4021_v57  ;;  %v4098_v57 = vld [vmem:[#allocation4 + $0x9e0] ss:$16 sps:$4 sm:$0xff]  }
  0xc6   :  { %2402 = vmatpush2.bf16.msra.mxu0 %v4016_v58  ;;  %v4101_v58 = vld [vmem:[#allocation2 + $0x28] ss:$0 sps:$4 sm:$0xff]  }
  0xc7   :  { %2443 = vmatpush2.bf16.msra.mxu1 %v4019_v59  ;;  %2403 = vmatprep.subr.bf16.mxu0 %v4024_v60  ;;  %v4102_v59 = vld [vmem:[#allocation4 + $0xe8] ss:$16 sps:$4 sm:$0xff]   ;;  %v4107_v60 = vld [vmem:[#allocation4 + $0x9c4] ss:$16 sps:$4 sm:$0xff]  }
  0xc8   :  { %2444 = vmatprep.subr.bf16.mxu1 %v4027_v61  ;;  %v4110_v61 = vld [vmem:[#allocation4 + $0xcc] ss:$16 sps:$4 sm:$0xff]  }
  0xca   :  { %2404 = vmatpush2.bf16.msra.mxu0 %v4022_v62  ;;  %v4105_v62 = vld [vmem:[#allocation4 + $0x9c0] ss:$16 sps:$4 sm:$0xff]  }
  0xcb   :  { %2445 = vmatpush2.bf16.msra.mxu1 %v4025_v63  ;;  %2405 = vmatprep.subr.bf16.mxu0 %v4030_v0  ;;  %v4108_v63 = vld [vmem:[#allocation4 + $0xc8] ss:$16 sps:$4 sm:$0xff]   ;;  %v4113_v0 = vld [vmem:[#allocation4 + $0x9a4] ss:$16 sps:$4 sm:$0xff]  }
  0xcc   :  { %2446 = vmatprep.subr.bf16.mxu1 %v4033_v1  ;;  %v4116_v1 = vld [vmem:[#allocation4 + $0xac] ss:$16 sps:$4 sm:$0xff]  }
  0xce   :  { %2406 = vmatpush2.bf16.msra.mxu0 %v4028_v2  ;;  %v4111_v2 = vld [vmem:[#allocation4 + $0x9a0] ss:$16 sps:$4 sm:$0xff]  }
  0xcf   :  { %2447 = vmatpush2.bf16.msra.mxu1 %v4031_v3  ;;  %2407 = vmatprep.subr.bf16.mxu0 %v4036_v4  ;;  %v4114_v3 = vld [vmem:[#allocation4 + $0xa8] ss:$16 sps:$4 sm:$0xff]   ;;  %v4119_v4 = vld [vmem:[#allocation4 + $0x984] ss:$16 sps:$4 sm:$0xff]  }
  0xd0   :  { %2448 = vmatprep.subr.bf16.mxu1 %v4039_v5  ;;  %v4122_v5 = vld [vmem:[#allocation4 + $0x8c] ss:$16 sps:$4 sm:$0xff]  }
  0xd2   :  { %2408 = vmatpush2.bf16.msra.mxu0 %v4034_v8  ;;  %v4117_v8 = vld [vmem:[#allocation4 + $0x980] ss:$16 sps:$4 sm:$0xff]  }
  0xd3   :  { %2449 = vmatpush2.bf16.msra.mxu1 %v4037_v9  ;;  %2409 = vmatprep.subr.bf16.mxu0 %v4042_v10  ;;  %v4120_v9 = vld [vmem:[#allocation4 + $0x88] ss:$16 sps:$4 sm:$0xff]   ;;  %v4125_v10 = vld [vmem:[#allocation4 + $0x964] ss:$16 sps:$4 sm:$0xff]  }
  0xd4   :  { %2450 = vmatprep.subr.bf16.mxu1 %v4045_v11  ;;  %v4128_v11 = vld [vmem:[#allocation4 + $0x6c] ss:$16 sps:$4 sm:$0xff]  }
  0xd6   :  { %2410 = vmatpush2.bf16.msra.mxu0 %v4040_v12  ;;  %v4123_v12 = vld [vmem:[#allocation4 + $0x960] ss:$16 sps:$4 sm:$0xff]  }
  0xd7   :  { %2451 = vmatpush2.bf16.msra.mxu1 %v4043_v13  ;;  %2461 = vmatprep.subr.bf16.mxu0 %v4052_v14  ;;  %v4126_v13 = vld [vmem:[#allocation4 + $0x68] ss:$16 sps:$4 sm:$0xff]   ;;  %v4134_v14 = vld [vmem:[#allocation4 + $0x4c] ss:$16 sps:$4 sm:$0xff]  }
  0xd8   :  { %2502 = vmatprep.subr.bf16.mxu1 %v4055_v15  ;;  %v4129_v15 = vld [vmem:[#allocation4 + $0x940] ss:$16 sps:$4 sm:$0xff]  }
  0xd9   :  { %2412 = vmatmul.mubr.bf16.vlgmr.msra.gmra.mxu0 %v4697_v16 }
  0xda   :  { %2453 = vmatmul.mubr.bf16.vlgmr.msra.gmra.mxu1 %v4701_v17  ;;  %2462 = vmatpush1.bf16.msra.mxu0 %v4050_v18  ;;  %v4132_v18 = vld [vmem:[#allocation4 + $0x48] ss:$16 sps:$4 sm:$0xff]  }
  0xdb   :  { %2503 = vmatpush1.bf16.msra.mxu1 %v4053_v19  ;;  %2463 = vmatprep.subr.bf16.mxu0 %v4058_v20  ;;  %v4137_v19 = vld [vmem:[#allocation4 + $0x924] ss:$16 sps:$4 sm:$0xff]   ;;  %v4140_v20 = vld [vmem:[#allocation4 + $0x2c] ss:$16 sps:$4 sm:$0xff]  }
  0xdc   :  { %2504 = vmatprep.subr.bf16.mxu1 %v4061_v21  ;;  %2534 = vmatprep.mubr.bf16.mxu1 %v4595_v28  ;;  %v4135_v21 = vld [vmem:[#allocation4 + $0x920] ss:$16 sps:$4 sm:$0xff]  }
  0xdd   :  { %2493 = vmatprep.mubr.bf16.mxu0 %v4709_v24 }
  0xde   :  { %2464 = vmatpush1.bf16.msra.mxu0 %v4056_v23  ;;  %v4138_v23 = vld [vmem:[#allocation4 + $0x28] ss:$16 sps:$4 sm:$0xff]  }
  0xdf   :  { %2505 = vmatpush1.bf16.msra.mxu1 %v4059_v25  ;;  %2465 = vmatprep.subr.bf16.mxu0 %v4064_v26  ;;  %v4143_v25 = vld [vmem:[#allocation4 + $0x904] ss:$16 sps:$4 sm:$0xff]   ;;  %v4146_v26 = vld [vmem:[#allocation4 + $0xc] ss:$16 sps:$4 sm:$0xff]  }
  0xe0   :  { %2506 = vmatprep.subr.bf16.mxu1 %v4067_v27  ;;  %v4141_v27 = vld [vmem:[#allocation4 + $0x900] ss:$16 sps:$4 sm:$0xff]  }
  0xe2   :  { %2466 = vmatpush1.bf16.msra.mxu0 %v4062_v29  ;;  %v4144_v29 = vld [vmem:[#allocation4 + $0x8] ss:$16 sps:$4 sm:$0xff]  }
  0xe3   :  { %2507 = vmatpush1.bf16.msra.mxu1 %v4065_v30  ;;  %2467 = vmatprep.subr.bf16.mxu0 %v4070_v31  ;;  %v4151_v30 = vld [vmem:[#allocation4 + $0x1ec] ss:$16 sps:$4 sm:$0xff]  }
  0xe4   :  { %2508 = vmatprep.subr.bf16.mxu1 %v4073_v32  ;;  %v4154_v31 = vld [vmem:[#allocation4 + $0x2ec] ss:$16 sps:$4 sm:$0xff]   ;;  %v4716_v32 = vcombine.low %v4703_v22, %v4703_v22  ;;  %v4161_v22 = vld [vmem:[#allocation4 + $0x1a8] ss:$16 sps:$4 sm:$0xff]  }
  0xe6   :  { %2468 = vmatpush1.bf16.msra.mxu0 %v4068_v33  ;;  %v4149_v33 = vld [vmem:[#allocation4 + $0x1e8] ss:$16 sps:$4 sm:$0xff]  }
  0xe7   :  { %2509 = vmatpush1.bf16.msra.mxu1 %v4071_v34  ;;  %2469 = vmatprep.subr.bf16.mxu0 %v4076_v35  ;;  %v4152_v34 = vld [vmem:[#allocation4 + $0x2e8] ss:$16 sps:$4 sm:$0xff]   ;;  %v4157_v35 = vld [vmem:[#allocation4 + $0x1cc] ss:$16 sps:$4 sm:$0xff]  }
  0xe8   :  { %2510 = vmatprep.subr.bf16.mxu1 %v4079_v38  ;;  %v4160_v38 = vld [vmem:[#allocation4 + $0x2cc] ss:$16 sps:$4 sm:$0xff]  }
  0xea   :  { %2470 = vmatpush1.bf16.msra.mxu0 %v4074_v39  ;;  %v4155_v39 = vld [vmem:[#allocation4 + $0x1c8] ss:$16 sps:$4 sm:$0xff]  }
  0xeb   :  { %2511 = vmatpush1.bf16.msra.mxu1 %v4077_v40  ;;  %2471 = vmatprep.subr.bf16.mxu0 %v4082_v41  ;;  %v4158_v40 = vld [vmem:[#allocation4 + $0x2c8] ss:$16 sps:$4 sm:$0xff]   ;;  %v4163_v41 = vld [vmem:[#allocation4 + $0x1ac] ss:$16 sps:$4 sm:$0xff]  }
  0xec   :  { %2512 = vmatprep.subr.bf16.mxu1 %v4085_v42  ;;  %v4166_v42 = vld [vmem:[#allocation4 + $0x2ac] ss:$16 sps:$4 sm:$0xff]  }
  0xee   :  { %2472 = vmatpush1.bf16.msra.mxu0 %v4080_v43  ;;  %v4164_v43 = vld [vmem:[#allocation4 + $0x2a8] ss:$16 sps:$4 sm:$0xff]  }
  0xef   :  { %2513 = vmatpush1.bf16.msra.mxu1 %v4083_v44  ;;  %2473 = vmatprep.subr.bf16.mxu0 %v4088_v45  ;;  %v4169_v44 = vld [vmem:[#allocation4 + $0x18c] ss:$16 sps:$4 sm:$0xff]  }
  0xf0   :  { %2514 = vmatprep.subr.bf16.mxu1 %v4091_v46  ;;  %v4172_v45 = vld [vmem:[#allocation4 + $0x28c] ss:$16 sps:$4 sm:$0xff]   ;;  %v4167_v46 = vld [vmem:[#allocation4 + $0x188] ss:$16 sps:$4 sm:$0xff]  }
  0xf2   :  { %2474 = vmatpush1.bf16.msra.mxu0 %v4086_v48  ;;  %v4170_v48 = vld [vmem:[#allocation4 + $0x288] ss:$16 sps:$4 sm:$0xff]  }
  0xf3   :  { %2515 = vmatpush1.bf16.msra.mxu1 %v4089_v49  ;;  %2475 = vmatprep.subr.bf16.mxu0 %v4094_v50  ;;  %v4175_v49 = vld [vmem:[#allocation4 + $0x16c] ss:$16 sps:$4 sm:$0xff]  }
  0xf4   :  { %2516 = vmatprep.subr.bf16.mxu1 %v4097_v52  ;;  %v4178_v50 = vld [vmem:[#allocation4 + $0x26c] ss:$16 sps:$4 sm:$0xff]   ;;  %v4173_v52 = vld [vmem:[#allocation4 + $0x168] ss:$16 sps:$4 sm:$0xff]  }
  0xf6   :  { %2476 = vmatpush1.bf16.msra.mxu0 %v4092_v53  ;;  %v4176_v53 = vld [vmem:[#allocation4 + $0x268] ss:$16 sps:$4 sm:$0xff]  }
  0xf7   :  { %2517 = vmatpush1.bf16.msra.mxu1 %v4095_v54  ;;  %2477 = vmatprep.subr.bf16.mxu0 %v4100_v55  ;;  %v4184_v54 = vld [vmem:[#allocation4 + $0x24c] ss:$16 sps:$4 sm:$0xff]   ;;  %v4179_v55 = vld [vmem:[#allocation4 + $0x148] ss:$16 sps:$4 sm:$0xff]  }
  0xf8   :  { %2543 = vmatprep.subr.bf16.mxu1 %v4104_v56  ;;  %v4182_v56 = vld [vmem:[#allocation4 + $0x248] ss:$16 sps:$4 sm:$0xff]  }
  0xfa   :  { %2535 = vmatmul.mubr.bf16.vlgmr.msra.gmra.mxu1 %v4101_v58  ;;  %2478 = vmatpush2.bf16.msra.mxu0 %v4098_v57  ;;  %v4187_v57 = vld [vmem:[#allocation4 + $0x12c] ss:$16 sps:$4 sm:$0xff]  }
  0xfb   :  { %2544 = vmatpush1.bf16.msra.mxu1 %v4102_v59  ;;  %2479 = vmatprep.subr.bf16.mxu0 %v4107_v60  ;;  %v4190_v58 = vld [vmem:[#allocation4 + $0x22c] ss:$16 sps:$4 sm:$0xff]   ;;  %v4185_v59 = vld [vmem:[#allocation4 + $0x128] ss:$16 sps:$4 sm:$0xff]  }
  0xfc   :  { %2545 = vmatprep.subr.bf16.mxu1 %v4110_v61  ;;  %2575 = vmatprep.mubr.bf16.mxu1 %v4669_v47  ;;  %v4131_v47 = vld [vmem:[#allocation4 + $0x944] ss:$16 sps:$4 sm:$0xff]   ;;  %v4188_v60 = vld [vmem:[#allocation4 + $0x228] ss:$16 sps:$4 sm:$0xff]   ;;  %v4193_v61 = vld [vmem:[#allocation4 + $0x10c] ss:$16 sps:$4 sm:$0xff]  }
  0xfe   :  { %2480 = vmatpush2.bf16.msra.mxu0 %v4105_v62  ;;  %v4196_v62 = vld [vmem:[#allocation4 + $0x20c] ss:$16 sps:$4 sm:$0xff]  }
  0xff   :  { %2546 = vmatpush1.bf16.msra.mxu1 %v4108_v63  ;;  %2481 = vmatprep.subr.bf16.mxu0 %v4113_v0  ;;  %v4191_v63 = vld [vmem:[#allocation4 + $0x108] ss:$16 sps:$4 sm:$0xff]  }
 0x100   :  { %2547 = vmatprep.subr.bf16.mxu1 %v4116_v1  ;;  %v4194_v0 = vld [vmem:[#allocation4 + $0x208] ss:$16 sps:$4 sm:$0xff]   ;;  %v4199_v1 = vld [vmem:[#allocation4 + $0x3ec] ss:$16 sps:$4 sm:$0xff]  }
 0x102   :  { %2482 = vmatpush2.bf16.msra.mxu0 %v4111_v2  ;;  %v4202_v2 = vld [vmem:[#allocation4 + $0x4ec] ss:$16 sps:$4 sm:$0xff]  }
 0x103   :  { %2548 = vmatpush1.bf16.msra.mxu1 %v4114_v3  ;;  %2483 = vmatprep.subr.bf16.mxu0 %v4119_v4  ;;  %v4197_v3 = vld [vmem:[#allocation4 + $0x3e8] ss:$16 sps:$4 sm:$0xff]  }
 0x104   :  { %2549 = vmatprep.subr.bf16.mxu1 %v4122_v5  ;;  %v4200_v4 = vld [vmem:[#allocation4 + $0x4e8] ss:$16 sps:$4 sm:$0xff]   ;;  %v4205_v5 = vld [vmem:[#allocation4 + $0x3cc] ss:$16 sps:$4 sm:$0xff]  }
 0x106   :  { %2484 = vmatpush2.bf16.msra.mxu0 %v4117_v8  ;;  %v4208_v8 = vld [vmem:[#allocation4 + $0x4cc] ss:$16 sps:$4 sm:$0xff]  }
 0x107   :  { %2550 = vmatpush1.bf16.msra.mxu1 %v4120_v9  ;;  %2485 = vmatprep.subr.bf16.mxu0 %v4125_v10  ;;  %v4203_v9 = vld [vmem:[#allocation4 + $0x3c8] ss:$16 sps:$4 sm:$0xff]  }
 0x108   :  { %2551 = vmatprep.subr.bf16.mxu1 %v4128_v11  ;;  %v4206_v10 = vld [vmem:[#allocation4 + $0x4c8] ss:$16 sps:$4 sm:$0xff]   ;;  %v4211_v11 = vld [vmem:[#allocation4 + $0x3ac] ss:$16 sps:$4 sm:$0xff]  }
 0x10a   :  { %2486 = vmatpush2.bf16.msra.mxu0 %v4123_v12  ;;  %v478_v12 = vlaneseq }
 0x10b   :  { %2552 = vmatpush1.bf16.msra.mxu1 %v4126_v13  ;;  %2487 = vmatprep.subr.bf16.mxu0 %v4131_v47  ;;  %v4214_v13 = vld [vmem:[#allocation4 + $0x4ac] ss:$16 sps:$4 sm:$0xff]   ;;  %v4209_v47 = vld [vmem:[#allocation4 + $0x3a8] ss:$16 sps:$4 sm:$0xff]  }
 0x10c   :  { %2553 = vmatprep.subr.bf16.mxu1 %v4134_v14  ;;  %v4212_v14 = vld [vmem:[#allocation4 + $0x4a8] ss:$16 sps:$4 sm:$0xff]  }
 0x10e   :  { %2488 = vmatpush2.bf16.msra.mxu0 %v4129_v15  ;;  %v4217_v15 = vld [vmem:[#allocation4 + $0x38c] ss:$16 sps:$4 sm:$0xff]  }
 0x10f   :  { %2554 = vmatpush1.bf16.msra.mxu1 %v4132_v18  ;;  %2489 = vmatprep.subr.bf16.mxu0 %v4137_v19  ;;  %v4722_v18 = vshrl.u32 %v478_v12, 7  ;;  %v4215_v19 = vld [vmem:[#allocation4 + $0x388] ss:$16 sps:$4 sm:$0xff]   ;;  %v4271_v12 = vld [vmem:[#allocation4 + $0x56c] ss:$16 sps:$4 sm:$0xff]  }
 0x110   :  { %2555 = vmatprep.subr.bf16.mxu1 %v4140_v20  ;;  %v4218_v20 = vld [vmem:[#allocation4 + $0x488] ss:$16 sps:$4 sm:$0xff]  }
 0x112   :  { %2490 = vmatpush2.bf16.msra.mxu0 %v4135_v21  ;;  %v4223_v21 = vld [vmem:[#allocation4 + $0x36c] ss:$16 sps:$4 sm:$0xff]  }
 0x113   :  { %2556 = vmatpush1.bf16.msra.mxu1 %v4138_v23  ;;  %2491 = vmatprep.subr.bf16.mxu0 %v4143_v25  ;;  %v480_v23 = vsub.s32 0, %v4722_v18  ;;  %v484_v25 = vsub.s32 1, %v4722_v18 }
 0x114   :  { %2557 = vmatprep.subr.bf16.mxu1 %v4146_v26  ;;  %v4221_v26 = vld [vmem:[#allocation4 + $0x368] ss:$16 sps:$4 sm:$0xff]  }
 0x116   :  { %2492 = vmatpush2.bf16.msra.mxu0 %v4141_v27  ;;  %v4224_v27 = vld [vmem:[#allocation4 + $0x468] ss:$16 sps:$4 sm:$0xff]  }
 0x117   :  { %2558 = vmatpush1.bf16.msra.mxu1 %v4144_v29  ;;  %2584 = vmatprep.subr.bf16.mxu0 %v4154_v31  ;;  %v4229_v29 = vld [vmem:[#allocation4 + $0x34c] ss:$16 sps:$4 sm:$0xff]   ;;  %v4227_v31 = vld [vmem:[#allocation4 + $0x348] ss:$16 sps:$4 sm:$0xff]  }
 0x118   :  { %2559 = vmatprep.subr.bf16.mxu1 %v4151_v30  ;;  %v4232_v30 = vld [vmem:[#allocation4 + $0x44c] ss:$16 sps:$4 sm:$0xff]  }
 0x119   :  { %2494 = vmatmul.mubr.bf16.vlgmr.msra.gmra.mxu0 %v4716_v32 }
 0x11a   :  { %2585 = vmatpush1.bf16.msra.mxu0 %v4152_v34  ;;  %2616 = vmatprep.mubr.bf16.mxu0 %v4671_v51  ;;  %v4181_v51 = vld [vmem:[#allocation4 + $0x14c] ss:$16 sps:$4 sm:$0xff]  }
 0x11b   :  { %2560 = vmatpush2.bf16.msra.mxu1 %v4149_v33  ;;  %2586 = vmatprep.subr.bf16.mxu0 %v4160_v38  ;;  %v4230_v33 = vld [vmem:[#allocation4 + $0x448] ss:$16 sps:$4 sm:$0xff]   ;;  %v4235_v34 = vld [vmem:[#allocation4 + $0x32c] ss:$16 sps:$4 sm:$0xff]  }
 0x11c   :  { %2561 = vmatprep.subr.bf16.mxu1 %v4157_v35  ;;  %v4238_v35 = vld [vmem:[#allocation4 + $0x42c] ss:$16 sps:$4 sm:$0xff]   ;;  %v4233_v38 = vld [vmem:[#allocation4 + $0x328] ss:$16 sps:$4 sm:$0xff]  }
 0x11e   :  { %2587 = vmatpush1.bf16.msra.mxu0 %v4158_v40  ;;  %v4241_v40 = vld [vmem:[#allocation4 + $0x30c] ss:$16 sps:$4 sm:$0xff]  }
 0x11f   :  { %2562 = vmatpush2.bf16.msra.mxu1 %v4155_v39  ;;  %2588 = vmatprep.subr.bf16.mxu0 %v4166_v42  ;;  %v4236_v39 = vld [vmem:[#allocation4 + $0x428] ss:$16 sps:$4 sm:$0xff]  }
 0x120   :  { %2563 = vmatprep.subr.bf16.mxu1 %v4163_v41  ;;  %v4244_v41 = vld [vmem:[#allocation4 + $0x40c] ss:$16 sps:$4 sm:$0xff]   ;;  %v4239_v42 = vld [vmem:[#allocation4 + $0x308] ss:$16 sps:$4 sm:$0xff]  }
 0x122   :  { %2589 = vmatpush1.bf16.msra.mxu0 %v4164_v43  ;;  %v4726_v43 = vld [vmem:[#allocation6] sm:$0xf] }
 0x123   :  { %2564 = vmatpush2.bf16.msra.mxu1 %v4161_v22  ;;  %2590 = vmatprep.subr.bf16.mxu0 %v4172_v45  ;;  %v4242_v22 = vld [vmem:[#allocation4 + $0x408] ss:$16 sps:$4 sm:$0xff]   ;;  %v4250_v45 = vld [vmem:[#allocation4 + $0x6ec] ss:$16 sps:$4 sm:$0xff]  }
 0x124   :  { %2565 = vmatprep.subr.bf16.mxu1 %v4169_v44  ;;  %v4247_v44 = vld [vmem:[#allocation4 + $0x5ec] ss:$16 sps:$4 sm:$0xff]  }
 0x126   :  { %2591 = vmatpush1.bf16.msra.mxu0 %v4170_v48  ;;  %v4248_v48 = vld [vmem:[#allocation4 + $0x6e8] ss:$16 sps:$4 sm:$0xff]  }
 0x127   :  { %2566 = vmatpush2.bf16.msra.mxu1 %v4167_v46  ;;  %2592 = vmatprep.subr.bf16.mxu0 %v4178_v50  ;;  %v4245_v46 = vld [vmem:[#allocation4 + $0x5e8] ss:$16 sps:$4 sm:$0xff]   ;;  %v481_v50 = vrot.slane %v4726_v43, %v480_v23 }
 0x128   :  { %2567 = vmatprep.subr.bf16.mxu1 %v4175_v49  ;;  %v4253_v49 = vld [vmem:[#allocation4 + $0x5cc] ss:$16 sps:$4 sm:$0xff]   ;;  %v4281_v23 = vld [vmem:[#allocation4 + $0x528] ss:$16 sps:$4 sm:$0xff]  }
 0x12a   :  { %2593 = vmatpush1.bf16.msra.mxu0 %v4176_v53  ;;  %v485_v53 = vrot.slane %v4726_v43, %v484_v25  ;;  %v4284_v25 = vld [vmem:[#allocation4 + $0x628] ss:$16 sps:$4 sm:$0xff]  }
 0x12b   :  { %2568 = vmatpush2.bf16.msra.mxu1 %v4173_v52  ;;  %2594 = vmatprep.subr.bf16.mxu0 %v4184_v54  ;;  %v4256_v52 = vld [vmem:[#allocation4 + $0x6cc] ss:$16 sps:$4 sm:$0xff]   ;;  %v4254_v54 = vld [vmem:[#allocation4 + $0x6c8] ss:$16 sps:$4 sm:$0xff]  }
 0x12c   :  { %2569 = vmatprep.subr.bf16.mxu1 %v4181_v51  ;;  %v4251_v51 = vld [vmem:[#allocation4 + $0x5c8] ss:$16 sps:$4 sm:$0xff]  }
 0x12e   :  { %2595 = vmatpush1.bf16.msra.mxu0 %v4182_v56 }
 0x12f   :  { %2570 = vmatpush2.bf16.msra.mxu1 %v4179_v55  ;;  %2596 = vmatprep.subr.bf16.mxu0 %v4190_v58 }
 0x130   :  { %2571 = vmatprep.subr.bf16.mxu1 %v4187_v57  ;;  %v4259_v57 = vld [vmem:[#allocation4 + $0x5ac] ss:$16 sps:$4 sm:$0xff]  }
 0x132   :  { %2597 = vmatpush1.bf16.msra.mxu0 %v4188_v60 }
 0x133   :  { %2572 = vmatpush2.bf16.msra.mxu1 %v4185_v59  ;;  %2598 = vmatprep.subr.bf16.mxu0 %v4196_v62 }
 0x134   :  { %2573 = vmatprep.subr.bf16.mxu1 %v4193_v61  ;;  %v4262_v61 = vld [vmem:[#allocation4 + $0x6ac] ss:$16 sps:$4 sm:$0xff]  }
 0x136   :  { %2599 = vmatpush1.bf16.msra.mxu0 %v4194_v0  ;;  %v4257_v0 = vld [vmem:[#allocation4 + $0x5a8] ss:$16 sps:$4 sm:$0xff]  }
 0x137   :  { %2574 = vmatpush2.bf16.msra.mxu1 %v4191_v63  ;;  %2600 = vmatprep.subr.bf16.mxu0 %v4199_v1  ;;  %v4260_v1 = vld [vmem:[#allocation4 + $0x6a8] ss:$16 sps:$4 sm:$0xff]  }
 0x138   :  { %2625 = vmatprep.subr.bf16.mxu1 %v4202_v2 }
 0x13a   :  { %2576 = vmatmul.mubr.bf16.vlgmr.msra.gmra.mxu1 %v4675_v6  ;;  %2601 = vmatpush2.bf16.msra.mxu0 %v4197_v3  ;;  %v4220_v6 = vld [vmem:[#allocation4 + $0x48c] ss:$16 sps:$4 sm:$0xff]  }
 0x13b   :  { %2626 = vmatpush1.bf16.msra.mxu1 %v4200_v4  ;;  %2602 = vmatprep.subr.bf16.mxu0 %v4205_v5  ;;  %v4265_v4 = vld [vmem:[#allocation4 + $0x58c] ss:$16 sps:$4 sm:$0xff]  }
 0x13c   :  { %2627 = vmatprep.subr.bf16.mxu1 %v4208_v8  ;;  %2657 = vmatprep.mubr.bf16.mxu1 %v4687_v36  ;;  %v4226_v36 = vld [vmem:[#allocation4 + $0x46c] ss:$16 sps:$4 sm:$0xff]  }
 0x13e   :  { %2603 = vmatpush2.bf16.msra.mxu0 %v4203_v9  ;;  %v4268_v9 = vld [vmem:[#allocation4 + $0x68c] ss:$16 sps:$4 sm:$0xff]  }
 0x13f   :  { %2628 = vmatpush1.bf16.msra.mxu1 %v4206_v10  ;;  %2604 = vmatprep.subr.bf16.mxu0 %v4211_v11  ;;  %v4263_v10 = vld [vmem:[#allocation4 + $0x588] ss:$16 sps:$4 sm:$0xff]  }
 0x140   :  { %2629 = vmatprep.subr.bf16.mxu1 %v4214_v13  ;;  %v4266_v11 = vld [vmem:[#allocation4 + $0x688] ss:$16 sps:$4 sm:$0xff]   ;;  %v4274_v13 = vld [vmem:[#allocation4 + $0x66c] ss:$16 sps:$4 sm:$0xff]  }
 0x142   :  { %2605 = vmatpush2.bf16.msra.mxu0 %v4209_v47  ;;  %v4272_v47 = vld [vmem:[#allocation4 + $0x668] ss:$16 sps:$4 sm:$0xff]  }
 0x143   :  { %2630 = vmatpush1.bf16.msra.mxu1 %v4212_v14  ;;  %2606 = vmatprep.subr.bf16.mxu0 %v4217_v15  ;;  %v4277_v14 = vld [vmem:[#allocation4 + $0x54c] ss:$16 sps:$4 sm:$0xff]  }
 0x144   :  { %2631 = vmatprep.subr.bf16.mxu1 %v4220_v6  ;;  %v4280_v15 = vld [vmem:[#allocation4 + $0x64c] ss:$16 sps:$4 sm:$0xff]   ;;  %v4275_v6 = vld [vmem:[#allocation4 + $0x548] ss:$16 sps:$4 sm:$0xff]  }
 0x146   :  { %2607 = vmatpush2.bf16.msra.mxu0 %v4215_v19  ;;  %v4278_v19 = vld [vmem:[#allocation4 + $0x648] ss:$16 sps:$4 sm:$0xff]  }
 0x147   :  { %2632 = vmatpush1.bf16.msra.mxu1 %v4218_v20  ;;  %2608 = vmatprep.subr.bf16.mxu0 %v4223_v21  ;;  %v4283_v20 = vld [vmem:[#allocation4 + $0x52c] ss:$16 sps:$4 sm:$0xff]  }
 0x148   :  { %2633 = vmatprep.subr.bf16.mxu1 %v4226_v36  ;;  %v4286_v21 = vld [vmem:[#allocation4 + $0x62c] ss:$16 sps:$4 sm:$0xff]  }
 0x149   :  { %v4289_v36 = vld [vmem:[#allocation4 + $0x50c] ss:$16 sps:$4 sm:$0xff]  }
 0x14a   :  { %2609 = vmatpush2.bf16.msra.mxu0 %v4221_v26  ;;  %v4292_v26 = vld [vmem:[#allocation4 + $0x60c] ss:$16 sps:$4 sm:$0xff]  }
 0x14b   :  { %2634 = vmatpush1.bf16.msra.mxu1 %v4224_v27  ;;  %2610 = vmatprep.subr.bf16.mxu0 %v4229_v29  ;;  %v4287_v27 = vld [vmem:[#allocation4 + $0x508] ss:$16 sps:$4 sm:$0xff]  }
 0x14c   :  { %2635 = vmatprep.subr.bf16.mxu1 %v4232_v30  ;;  %v4290_v29 = vld [vmem:[#allocation4 + $0x608] ss:$16 sps:$4 sm:$0xff]   ;;  %v4295_v30 = vld [vmem:[#allocation4 + $0x7ec] ss:$16 sps:$4 sm:$0xff]  }
 0x14e   :  { %2611 = vmatpush2.bf16.msra.mxu0 %v4227_v31  ;;  %v4298_v31 = vld [vmem:[#allocation4 + $0x8ec] ss:$16 sps:$4 sm:$0xff]  }
 0x14f   :  { %2636 = vmatpush1.bf16.msra.mxu1 %v4230_v33  ;;  %2612 = vmatprep.subr.bf16.mxu0 %v4235_v34  ;;  %v4293_v33 = vld [vmem:[#allocation4 + $0x7e8] ss:$16 sps:$4 sm:$0xff]  }
 0x150   :  { %2637 = vmatprep.subr.bf16.mxu1 %v4238_v35  ;;  %v4296_v34 = vld [vmem:[#allocation4 + $0x8e8] ss:$16 sps:$4 sm:$0xff]   ;;  %v4301_v35 = vld [vmem:[#allocation4 + $0x7cc] ss:$16 sps:$4 sm:$0xff]  }
 0x152   :  { %2613 = vmatpush2.bf16.msra.mxu0 %v4233_v38  ;;  %v4304_v38 = vld [vmem:[#allocation4 + $0x8cc] ss:$16 sps:$4 sm:$0xff]  }
 0x153   :  { %2638 = vmatpush1.bf16.msra.mxu1 %v4236_v39  ;;  %2614 = vmatprep.subr.bf16.mxu0 %v4241_v40  ;;  %v4299_v39 = vld [vmem:[#allocation4 + $0x7c8] ss:$16 sps:$4 sm:$0xff]  }
 0x154   :  { %2639 = vmatprep.subr.bf16.mxu1 %v4244_v41  ;;  %v4302_v40 = vld [vmem:[#allocation4 + $0x8c8] ss:$16 sps:$4 sm:$0xff]   ;;  %v4307_v41 = vld [vmem:[#allocation4 + $0x7ac] ss:$16 sps:$4 sm:$0xff]  }
 0x156   :  { %2615 = vmatpush2.bf16.msra.mxu0 %v4239_v42  ;;  %v4310_v42 = vld [vmem:[#allocation4 + $0x8ac] ss:$16 sps:$4 sm:$0xff]  }
 0x157   :  { %2640 = vmatpush1.bf16.msra.mxu1 %v4242_v22  ;;  %2666 = vmatprep.subr.bf16.mxu0 %v4250_v45  ;;  %v4305_v22 = vld [vmem:[#allocation4 + $0x7a8] ss:$16 sps:$4 sm:$0xff]   ;;  %v4313_v45 = vld [vmem:[#allocation4 + $0x78c] ss:$16 sps:$4 sm:$0xff]  }
 0x158   :  { %2641 = vmatprep.subr.bf16.mxu1 %v4247_v44  ;;  %v4308_v44 = vld [vmem:[#allocation4 + $0x8a8] ss:$16 sps:$4 sm:$0xff]  }
 0x159   :  { %v2331_v55 = vpop.f32.mrf.mxu0  ;;  %2617 = vmatmul.mubr.bf16.vlgmr.msra.gmra.mxu0 %v4677_v7 }
 0x15a   :  { %v2372_v56 = vpop.f32.mrf.mxu1  ;;  %v2332_v58 = vadd.f32 %v2331_v55, %v481_v50  ;;  %2667 = vmatpush1.bf16.msra.mxu0 %v4248_v48  ;;  %2698 = vmatprep.mubr.bf16.mxu0 %v4691_v37  ;;  %v4269_v37 = vld [vmem:[#allocation4 + $0x568] ss:$16 sps:$4 sm:$0xff]   ;;  %v4322_v50 = vld [vmem:[#allocation4 + $0x86c] ss:$16 sps:$4 sm:$0xff]  }
 0x15b   :  { %2642 = vmatpush2.bf16.msra.mxu1 %v4245_v46  ;;  %v2333_v59 = vpop.f32.mrf.mxu0  ;;  %2668 = vmatprep.subr.bf16.mxu0 %v4256_v52  ;;  %v4316_v46 = vld [vmem:[#allocation4 + $0x88c] ss:$16 sps:$4 sm:$0xff]   ;;  %v4314_v48 = vld [vmem:[#allocation4 + $0x888] ss:$16 sps:$4 sm:$0xff]  }
 0x15c   :  { %v2374_v60 = vpop.f32.mrf.mxu1  ;;  %2643 = vmatprep.subr.bf16.mxu1 %v4253_v49  ;;  %v4731_v62 = vadd.f32 %v2372_v56, %v2332_v58  ;;  %v2334_v63 = vadd.f32 %v2333_v59, %v485_v53  ;;  %v4319_v49 = vld [vmem:[#allocation4 + $0x76c] ss:$16 sps:$4 sm:$0xff]   ;;  %v4317_v52 = vld [vmem:[#allocation4 + $0x768] ss:$16 sps:$4 sm:$0xff]  }
 0x15d   :  { %v2335_v2 = vpop.f32.mrf.mxu0  ;;  %v4325_v53 = vld [vmem:[#allocation4 + $0x74c] ss:$16 sps:$4 sm:$0xff]   ;;  %v4326_v55 = vld [vmem:[#allocation4 + $0x848] ss:$16 sps:$4 sm:$0xff]  }
 0x15e   :  { %v2376_v3 = vpop.f32.mrf.mxu1  ;;  %v4734_v7 = vadd.f32 %v2374_v60, %v2334_v63  ;;  %2669 = vmatpush1.bf16.msra.mxu0 %v4254_v54  ;;  %v4323_v54 = vld [vmem:[#allocation4 + $0x748] ss:$16 sps:$4 sm:$0xff]   ;;  %v4331_v56 = vld [vmem:[#allocation4 + $0x72c] ss:$16 sps:$4 sm:$0xff]  }
 0x15f   :  { %2644 = vmatpush2.bf16.msra.mxu1 %v4251_v51  ;;  %v2336_v5 = vpop.f32.mrf.mxu0  ;;  %2670 = vmatprep.subr.bf16.mxu0 %v4262_v61  ;;  %v4328_v51 = vld [vmem:[#allocation4 + $0x84c] ss:$16 sps:$4 sm:$0xff]   ;;  %v4329_v58 = vld [vmem:[#allocation4 + $0x728] ss:$16 sps:$4 sm:$0xff]  }
 0x160   :  { %v2377_v8 = vpop.f32.mrf.mxu1  ;;  %2645 = vmatprep.subr.bf16.mxu1 %v4259_v57  ;;  %v4334_v57 = vld [vmem:[#allocation4 + $0x82c] ss:$16 sps:$4 sm:$0xff]   ;;  %v4332_v59 = vld [vmem:[#allocation4 + $0x828] ss:$16 sps:$4 sm:$0xff]  }
 0x161   :  { %v4337_v60 = vld [vmem:[#allocation4 + $0x70c] ss:$16 sps:$4 sm:$0xff]   ;;  %v4335_v63 = vld [vmem:[#allocation4 + $0x708] ss:$16 sps:$4 sm:$0xff]  }
 0x162   :  { %2671 = vmatpush1.bf16.msra.mxu0 %v4260_v1  ;;  %v4340_v61 = vld [vmem:[#allocation4 + $0x80c] ss:$16 sps:$4 sm:$0xff]   ;;  %v4341_v3 = vld [vmem:[#allocation4 + $0x9e8] ss:$16 sps:$4 sm:$0xff]  }
 0x163   :  { %2646 = vmatpush2.bf16.msra.mxu1 %v4257_v0  ;;  %2672 = vmatprep.subr.bf16.mxu0 %v4268_v9  ;;  %v4338_v0 = vld [vmem:[#allocation4 + $0x808] ss:$16 sps:$4 sm:$0xff]   ;;  %v4343_v1 = vld [vmem:[#allocation4 + $0x9ec] ss:$16 sps:$4 sm:$0xff]  }
 0x164   :  { %2647 = vmatprep.subr.bf16.mxu1 %v4265_v4  ;;  %v4346_v2 = vld [vmem:[#allocation4 + $0xaec] ss:$16 sps:$4 sm:$0xff]   ;;  %v4344_v4 = vld [vmem:[#allocation4 + $0xae8] ss:$16 sps:$4 sm:$0xff]  }
 0x165   :  { %v4349_v5 = vld [vmem:[#allocation4 + $0x9cc] ss:$16 sps:$4 sm:$0xff]  }
 0x166   :  { %2673 = vmatpush1.bf16.msra.mxu0 %v4266_v11  ;;  %v4352_v8 = vld [vmem:[#allocation4 + $0xacc] ss:$16 sps:$4 sm:$0xff]  }
 0x167   :  { %2648 = vmatpush2.bf16.msra.mxu1 %v4263_v10  ;;  %2674 = vmatprep.subr.bf16.mxu0 %v4274_v13  ;;  %v4350_v13 = vld [vmem:[#allocation4 + $0xac8] ss:$16 sps:$4 sm:$0xff]  }
 0x168   :  { %2649 = vmatprep.subr.bf16.mxu1 %v4271_v12  ;;  %v4347_v12 = vld [vmem:[#allocation4 + $0x9c8] ss:$16 sps:$4 sm:$0xff]  }
 0x16a   :  { %2675 = vmatpush1.bf16.msra.mxu0 %v4272_v47 }
 0x16b   :  { %2650 = vmatpush2.bf16.msra.mxu1 %v4269_v37  ;;  %2676 = vmatprep.subr.bf16.mxu0 %v4280_v15  ;;  %v4358_v15 = vld [vmem:[#allocation4 + $0xaac] ss:$16 sps:$4 sm:$0xff]  }
 0x16c   :  { %2651 = vmatprep.subr.bf16.mxu1 %v4277_v14  ;;  %v4355_v14 = vld [vmem:[#allocation4 + $0x9ac] ss:$16 sps:$4 sm:$0xff]  }
 0x16e   :  { %2677 = vmatpush1.bf16.msra.mxu0 %v4278_v19 }
 0x16f   :  { %2652 = vmatpush2.bf16.msra.mxu1 %v4275_v6  ;;  %2678 = vmatprep.subr.bf16.mxu0 %v4286_v21 }
 0x170   :  { %2653 = vmatprep.subr.bf16.mxu1 %v4283_v20  ;;  %v4356_v20 = vld [vmem:[#allocation4 + $0xaa8] ss:$16 sps:$4 sm:$0xff]  }
 0x172   :  { %2679 = vmatpush1.bf16.msra.mxu0 %v4284_v25  ;;  %v4361_v25 = vld [vmem:[#allocation4 + $0x98c] ss:$16 sps:$4 sm:$0xff]  }
 0x173   :  { %2654 = vmatpush2.bf16.msra.mxu1 %v4281_v23  ;;  %2680 = vmatprep.subr.bf16.mxu0 %v4292_v26  ;;  %v4359_v26 = vld [vmem:[#allocation4 + $0x988] ss:$16 sps:$4 sm:$0xff]  }
 0x174   :  { %2655 = vmatprep.subr.bf16.mxu1 %v4289_v36  ;;  %v4364_v36 = vld [vmem:[#allocation4 + $0xa8c] ss:$16 sps:$4 sm:$0xff]  }
 0x176   :  { %2681 = vmatpush1.bf16.msra.mxu0 %v4290_v29  ;;  %v4367_v29 = vld [vmem:[#allocation4 + $0x96c] ss:$16 sps:$4 sm:$0xff]  }
 0x177   :  { %2656 = vmatpush2.bf16.msra.mxu1 %v4287_v27  ;;  %2682 = vmatprep.subr.bf16.mxu0 %v4295_v30  ;;  %v4362_v27 = vld [vmem:[#allocation4 + $0xa88] ss:$16 sps:$4 sm:$0xff]  }
 0x178   :  { %2707 = vmatprep.subr.bf16.mxu1 %v4298_v31  ;;  %v4365_v30 = vld [vmem:[#allocation4 + $0x968] ss:$16 sps:$4 sm:$0xff]  }
 0x179   :  { %v4368_v31 = vld [vmem:[#allocation4 + $0xa68] ss:$16 sps:$4 sm:$0xff]  }
 0x17a   :  { %2658 = vmatmul.mubr.bf16.vlgmr.msra.gmra.mxu1 %v4697_v16  ;;  %2683 = vmatpush2.bf16.msra.mxu0 %v4293_v33  ;;  %v4311_v16 = vld [vmem:[#allocation4 + $0x788] ss:$16 sps:$4 sm:$0xff]   ;;  %v4373_v33 = vld [vmem:[#allocation4 + $0x94c] ss:$16 sps:$4 sm:$0xff]  }
 0x17b   :  { %2708 = vmatpush1.bf16.msra.mxu1 %v4296_v34  ;;  %2684 = vmatprep.subr.bf16.mxu0 %v4301_v35  ;;  %v4376_v34 = vld [vmem:[#allocation4 + $0xa4c] ss:$16 sps:$4 sm:$0xff]   ;;  %v4371_v35 = vld [vmem:[#allocation4 + $0x948] ss:$16 sps:$4 sm:$0xff]  }
 0x17c   :  { %2709 = vmatprep.subr.bf16.mxu1 %v4304_v38  ;;  %2739 = vmatprep.mubr.bf16.mxu1 %v4709_v24  ;;  %v4320_v24 = vld [vmem:[#allocation4 + $0x868] ss:$16 sps:$4 sm:$0xff]  }
 0x17d   :  { %v4374_v38 = vld [vmem:[#allocation4 + $0xa48] ss:$16 sps:$4 sm:$0xff]  }
 0x17e   :  { %2685 = vmatpush2.bf16.msra.mxu0 %v4299_v39  ;;  %v4379_v39 = vld [vmem:[#allocation4 + $0x92c] ss:$16 sps:$4 sm:$0xff]  }
 0x17f   :  { %2710 = vmatpush1.bf16.msra.mxu1 %v4302_v40  ;;  %2686 = vmatprep.subr.bf16.mxu0 %v4307_v41  ;;  %v4382_v40 = vld [vmem:[#allocation4 + $0xa2c] ss:$16 sps:$4 sm:$0xff]   ;;  %v4377_v41 = vld [vmem:[#allocation4 + $0x928] ss:$16 sps:$4 sm:$0xff]  }
 0x180   :  { %2711 = vmatprep.subr.bf16.mxu1 %v4310_v42  ;;  %v4380_v42 = vld [vmem:[#allocation4 + $0xa28] ss:$16 sps:$4 sm:$0xff]  }
 0x182   :  { %2687 = vmatpush2.bf16.msra.mxu0 %v4305_v22  ;;  %v4385_v22 = vld [vmem:[#allocation4 + $0x90c] ss:$16 sps:$4 sm:$0xff]  }
 0x183   :  { %2712 = vmatpush1.bf16.msra.mxu1 %v4308_v44  ;;  %2688 = vmatprep.subr.bf16.mxu0 %v4313_v45  ;;  %v4388_v44 = vld [vmem:[#allocation4 + $0xa0c] ss:$16 sps:$4 sm:$0xff]   ;;  %v4383_v45 = vld [vmem:[#allocation4 + $0x908] ss:$16 sps:$4 sm:$0xff]  }
 0x184   :  { %2713 = vmatprep.subr.bf16.mxu1 %v4316_v46  ;;  %v4386_v46 = vld [vmem:[#allocation4 + $0xa08] ss:$16 sps:$4 sm:$0xff]  }
 0x186   :  { %2689 = vmatpush2.bf16.msra.mxu0 %v4311_v16  ;;  %v4389_v16 = vld [vmem:[#allocation7 + $0x78] sm:$0xff]  }
 0x187   :  { %2714 = vmatpush1.bf16.msra.mxu1 %v4314_v48  ;;  %2690 = vmatprep.subr.bf16.mxu0 %v4319_v49  ;;  %v4390_v48 = vld [vmem:[#allocation7 + $0x38] sm:$0xff]   ;;  %v4391_v49 = vld [vmem:[#allocation7 + $0x70] sm:$0xff]  }
 0x188   :  { %2715 = vmatprep.subr.bf16.mxu1 %v4322_v50 }
 0x18a   :  { %2691 = vmatpush2.bf16.msra.mxu0 %v4317_v52  ;;  %v4435_v52 = vld [vmem:[#allocation2 + $0x28] ss:$0 sps:$4 sm:$0xff]  }
 0x18b   :  { %2716 = vmatpush1.bf16.msra.mxu1 %v4320_v24  ;;  %2692 = vmatprep.subr.bf16.mxu0 %v4325_v53  ;;  %v4392_v24 = vld [vmem:[#allocation7 + $0x30] sm:$0xff]  }
 0x18c   :  { %2717 = vmatprep.subr.bf16.mxu1 %v4328_v51  ;;  %v4393_v51 = vld [vmem:[#allocation7 + $0x68] sm:$0xff]  }
 0x18e   :  { %2693 = vmatpush2.bf16.msra.mxu0 %v4323_v54 }
 0x18f   :  { %2718 = vmatpush1.bf16.msra.mxu1 %v4326_v55  ;;  %2694 = vmatprep.subr.bf16.mxu0 %v4331_v56  ;;  %v4394_v55 = vld [vmem:[#allocation7 + $0x28] sm:$0xff]  }
 0x190   :  { %2719 = vmatprep.subr.bf16.mxu1 %v4334_v57  ;;  %v4395_v57 = vld [vmem:[#allocation7 + $0x60] sm:$0xff]  }
 0x192   :  { %2695 = vmatpush2.bf16.msra.mxu0 %v4329_v58  ;;  %v4396_v58 = vld [vmem:[#allocation7 + $0x20] sm:$0xff]  }
 0x193   :  { %2720 = vmatpush1.bf16.msra.mxu1 %v4332_v59  ;;  %2696 = vmatprep.subr.bf16.mxu0 %v4337_v60  ;;  %v4397_v59 = vld [vmem:[#allocation7 + $0x58] sm:$0xff]  }
 0x194   :  { %2721 = vmatprep.subr.bf16.mxu1 %v4340_v61  ;;  %v4398_v60 = vld [vmem:[#allocation7 + $0x18] sm:$0xff]   ;;  %v4400_v61 = vld [vmem:[#allocation7 + $0x10] sm:$0xff]  }
 0x196   :  { %2697 = vmatpush2.bf16.msra.mxu0 %v4335_v63  ;;  %v4401_v63 = vld [vmem:[#allocation7 + $0x48] sm:$0xff]  }
 0x197   :  { %2722 = vmatpush1.bf16.msra.mxu1 %v4338_v0  ;;  %2748 = vmatprep.subr.bf16.mxu0 %v4346_v2  ;;  %v4402_v0 = vld [vmem:[#allocation7 + $0x8] sm:$0xff]   ;;  %v4404_v2 = vld [vmem:[#allocation7] sm:$0xff]  }
 0x198   :  { %2723 = vmatprep.subr.bf16.mxu1 %v4343_v1  ;;  %v4403_v1 = vld [vmem:[#allocation7 + $0x40] sm:$0xff]  }
 0x199   :  { %v2413_v9 = vpop.f32.mrf.mxu0  ;;  %2699 = vmatmul.mubr.bf16.vlgmr.msra.gmra.mxu0 %v4701_v17 }
 0x19a   :  { %v2454_v10 = vpop.f32.mrf.mxu1  ;;  %v2414_v11 = vadd.f32 %v2413_v9, %v4731_v62  ;;  %2749 = vmatpush1.bf16.msra.mxu0 %v4344_v4  ;;  %2780 = vmatprep.mubr.bf16.mxu0 %v4595_v28  ;;  %v4353_v62 = vld [vmem:[#allocation4 + $0x9a8] ss:$16 sps:$4 sm:$0xff]   ;;  %v4370_v28 = vld [vmem:[#allocation4 + $0xa6c] ss:$16 sps:$4 sm:$0xff]  }
 0x19b   :  { %2724 = vmatpush2.bf16.msra.mxu1 %v4341_v3  ;;  %v4740_v37 = vpop.f32.mrf.mxu0  ;;  %2750 = vmatprep.subr.bf16.mxu0 %v4352_v8 }
 0x19c   :  { %v4742_v47 = vpop.f32.mrf.mxu1  ;;  %2725 = vmatprep.subr.bf16.mxu1 %v4349_v5  ;;  %v4744_v6 = vadd.f32 %v2454_v10, %v2414_v11  ;;  %v2416_v3 = vadd.f32 %v4740_v37, %v4734_v7  ;;  %v4408_v7 = vld [vmem:[#allocation7 + $0xb0] sm:$0xff]  }
 0x19d   :  { %v2417_v19 = vpop.f32.mrf.mxu0 }
 0x19e   :  { %v2458_v17 = vpop.f32.mrf.mxu1  ;;  %2751 = vmatpush1.bf16.msra.mxu0 %v4350_v13  ;;  %v2457_v5 = vadd.f32 %v4742_v47, %v2416_v3  ;;  %v4405_v19 = vld [vmem:[#allocation7 + $0xf8] sm:$0xff]   ;;  %v4409_v47 = vld [vmem:[#allocation7 + $0xe8] sm:$0xff]  }
 0x19f   :  { %2726 = vmatpush2.bf16.msra.mxu1 %v4347_v12  ;;  %v2418_v21 = vpop.f32.mrf.mxu0  ;;  %2752 = vmatprep.subr.bf16.mxu0 %v4358_v15  ;;  %v4406_v17 = vld [vmem:[#allocation7 + $0xb8] sm:$0xff]  }
 0x1a0   :  { %v2459_v23 = vpop.f32.mrf.mxu1  ;;  %2727 = vmatprep.subr.bf16.mxu1 %v4355_v14 }
 0x1a1   :  { %v4411_v23 = vld [vmem:[#allocation7 + $0xe0] sm:$0xff]  }
 0x1a2   :  { %2753 = vmatpush1.bf16.msra.mxu0 %v4356_v20 }
 0x1a3   :  { %2728 = vmatpush2.bf16.msra.mxu1 %v4353_v62  ;;  %2754 = vmatprep.subr.bf16.mxu0 %v4364_v36  ;;  %v4407_v62 = vld [vmem:[#allocation7 + $0xf0] sm:$0xff]   ;;  %v4413_v36 = vld [vmem:[#allocation7 + $0xd8] sm:$0xff]  }
 0x1a4   :  { %2729 = vmatprep.subr.bf16.mxu1 %v4361_v25  ;;  %v4412_v25 = vld [vmem:[#allocation7 + $0xa0] sm:$0xff]  }
 0x1a6   :  { %2755 = vmatpush1.bf16.msra.mxu0 %v4362_v27  ;;  %v4415_v27 = vld [vmem:[#allocation7 + $0xd0] sm:$0xff]  }
 0x1a7   :  { %2730 = vmatpush2.bf16.msra.mxu1 %v4359_v26  ;;  %2756 = vmatprep.subr.bf16.mxu0 %v4370_v28  ;;  %v4414_v26 = vld [vmem:[#allocation7 + $0x98] sm:$0xff]  }
 0x1a8   :  { %2731 = vmatprep.subr.bf16.mxu1 %v4367_v29  ;;  %v4416_v29 = vld [vmem:[#allocation7 + $0x90] sm:$0xff]  }
 0x1aa   :  { %2757 = vmatpush1.bf16.msra.mxu0 %v4368_v31  ;;  %v4417_v31 = vld [vmem:[#allocation7 + $0xc8] sm:$0xff]  }
 0x1ab   :  { %2732 = vmatpush2.bf16.msra.mxu1 %v4365_v30  ;;  %2758 = vmatprep.subr.bf16.mxu0 %v4376_v34 }
 0x1ac   :  { %2733 = vmatprep.subr.bf16.mxu1 %v4373_v33  ;;  %v4418_v33 = vld [vmem:[#allocation7 + $0x88] sm:$0xff]  }
 0x1ae   :  { %2759 = vmatpush1.bf16.msra.mxu0 %v4374_v38  ;;  %v4419_v38 = vld [vmem:[#allocation7 + $0xc0] sm:$0xff]  }
 0x1af   :  { %2734 = vmatpush2.bf16.msra.mxu1 %v4371_v35  ;;  %2760 = vmatprep.subr.bf16.mxu0 %v4382_v40  ;;  %v488_v40 = vsub.s32 2, %v4722_v18 }
 0x1b0   :  { %2735 = vmatprep.subr.bf16.mxu1 %v4379_v39  ;;  %v4420_v39 = vld [vmem:[#allocation7 + $0x80] sm:$0xff]  }
 0x1b2   :  { %2761 = vmatpush1.bf16.msra.mxu0 %v4380_v42  ;;  %v489_v42 = vrot.slane %v4726_v43, %v488_v40 }
 0x1b3   :  { %2736 = vmatpush2.bf16.msra.mxu1 %v4377_v41  ;;  %2762 = vmatprep.subr.bf16.mxu0 %v4388_v44  ;;  %v492_v41 = vsub.s32 3, %v4722_v18  ;;  %v4422_v18 = vld [vmem:[%s4809_s5 + $0x30] sm:$0xff]  }
 0x1b4   :  { %2737 = vmatprep.subr.bf16.mxu1 %v4385_v22 }
 0x1b5   :  { %v493_v22 = vrot.slane %v4726_v43, %v492_v41  ;;  %v4423_v43 = vld [vmem:[%s4809_s5 + $0x28] sm:$0xff]   ;;  %v4430_v41 = vld [vmem:[%s4811_s7] sm:$0xff]  }
 0x1b6   :  { %2763 = vmatpush1.bf16.msra.mxu0 %v4386_v46 }
 0x1b7   :  { %2738 = vmatpush2.bf16.msra.mxu1 %v4383_v45  ;;  %3752 = vmatprep.subr.bf16.mxu0 %v4389_v16 }
 0x1b8   :  { %3774 = vmatprep.subr.bf16.mxu1 %v4405_v19 }
 0x1b9   :  { %2781 = vmatmul.mubr.bf16.vlgmr.msra.gmra.mxu0 %v4435_v52 }
 0x1ba   :  { %v2536_v50 = vpop.f32.mrf.mxu1  ;;  %2740 = vmatmul.mubr.bf16.vlgmr.msra.gmra.mxu1 %v4716_v32  ;;  %3753 = vmatpush3.bf16.msra.mxu0 %v4390_v48  ;;  %v4399_v32 = vld [vmem:[#allocation7 + $0x50] sm:$0xff]  }
 0x1bb   :  { %3754 = vmatprep.subr.bf16.mxu0 %v4391_v49  ;;  %3775 = vmatpush3.bf16.msra.mxu1 %v4406_v17 }
 0x1bc   :  { %v2538_v53 = vpop.f32.mrf.mxu1  ;;  %3776 = vmatprep.subr.bf16.mxu1 %v4407_v62 }
 0x1be   :  { %v2540_v54 = vpop.f32.mrf.mxu1  ;;  %3755 = vmatpush3.bf16.msra.mxu0 %v4392_v24  ;;  %v4421_v24 = vld [vmem:[%s4809_s5 + $0x38] sm:$0xff]  }
 0x1bf   :  { %3756 = vmatprep.subr.bf16.mxu0 %v4393_v51  ;;  %3777 = vmatpush3.bf16.msra.mxu1 %v4408_v7  ;;  %v4424_v51 = vld [vmem:[%s4809_s5 + $0x20] sm:$0xff]  }
 0x1c0   :  { %v2541_v56 = vpop.f32.mrf.mxu1  ;;  %3778 = vmatprep.subr.bf16.mxu1 %v4409_v47 }
 0x1c2   :  { %3757 = vmatpush3.bf16.msra.mxu0 %v4394_v55  ;;  %v4425_v55 = vld [vmem:[%s4809_s5 + $0x18] sm:$0xff]  }
 0x1c3   :  { %3758 = vmatprep.subr.bf16.mxu0 %v4395_v57 }
 0x1c6   :  { %3759 = vmatpush3.bf16.msra.mxu0 %v4396_v58 }
 0x1c7   :  { %3760 = vmatprep.subr.bf16.mxu0 %v4397_v59 }
 0x1ca   :  { %3761 = vmatpush3.bf16.msra.mxu0 %v4398_v60 }
 0x1cb   :  { %3762 = vmatprep.subr.bf16.mxu0 %v4399_v32 }
 0x1ce   :  { %3763 = vmatpush3.bf16.msra.mxu0 %v4400_v61 }
 0x1cf   :  { %3764 = vmatprep.subr.bf16.mxu0 %v4401_v63 }
 0x1d2   :  { %3765 = vmatpush3.bf16.msra.mxu0 %v4402_v0 }
 0x1d3   :  { %3766 = vmatprep.subr.bf16.mxu0 %v4403_v1 }
 0x1d6   :  { %3767 = vmatpush3.bf16.msra.mxu0 %v4404_v2 }
 0x1d9   :  { %v2495_v4 = vpop.f32.mrf.mxu0 }
 0x1da   :  { %v2496_v8 = vadd.f32 %v2495_v4, %v4744_v6  ;;  %v4410_v6 = vld [vmem:[#allocation7 + $0xa8] sm:$0xff]  }
 0x1db   :  { %v2497_v9 = vpop.f32.mrf.mxu0  ;;  %3779 = vmatpush3.bf16.msra.mxu1 %v4410_v6 }
 0x1dc   :  { %v2537_v10 = vadd.f32 %v2536_v50, %v2496_v8  ;;  %v2498_v11 = vadd.f32 %v2497_v9, %v2457_v5  ;;  %3780 = vmatprep.subr.bf16.mxu1 %v4411_v23 }
 0x1dd   :  { %v2499_v12 = vpop.f32.mrf.mxu0 }
 0x1de   :  { %v2539_v13 = vadd.f32 %v2538_v53, %v2498_v11  ;;  %v2789_v14 = vmax.f32 %v2537_v10, 0.0  ;;  %v4596_v53 = vmov 0.0  }
 0x1df   :  { %v2500_v15 = vpop.f32.mrf.mxu0  ;;  %3781 = vmatpush3.bf16.msra.mxu1 %v4412_v25  ;;  %3808 = vmatprep.subr.bf16.mxu0 %v4596_v53  ;;  %v4426_v25 = vld [vmem:[%s4809_s5 + $0x10] sm:$0xff]  }
 0x1e0   :  { %v2790_v20 = vmax.f32 %v2539_v13, 0.0  ;;  %v2793_v37 = vpack.c.bf16 %v2789_v14, %v2789_v14  ;;  %3782 = vmatprep.subr.bf16.mxu1 %v4413_v36  ;;  %v4427_v36 = vld [vmem:[%s4809_s5 + $0x8] sm:$0xff]  }
 0x1e2   :  { %v2794_v21 = vpack.c.bf16 %v2790_v20, %v2790_v20 }
 0x1e3   :  { %3783 = vmatpush3.bf16.msra.mxu1 %v4414_v26  ;;  %v4428_v26 = vld [vmem:[%s4809_s5] sm:$0xff]  }
 0x1e4   :  { %3092 = vmatprep.mubr.bf16.mxu0 %v2794_v21  ;;  %3784 = vmatprep.subr.bf16.mxu1 %v4415_v27  ;;  %v4429_v27 = vld [vmem:[%s4811_s7 + $0x8] sm:$0xff]  }
 0x1e5   :  { %3093 = vmatmul.mubr.bf16.vlgmr.msra.gmra.mxu0 %v2793_v37 }
 0x1e6   :  { %3809 = vmatpush3.bf16.msra.mxu0 %v4421_v24  ;;  %3824 = vmatprep.mubr.msk.bf16.mxu0 %vm4597_vm0, %v4596_v53 }
 0x1e7   :  { %3785 = vmatpush3.bf16.msra.mxu1 %v4416_v29  ;;  %3810 = vmatprep.subr.bf16.mxu0 %v4596_v53  ;;  %v3706_v29 = vld [vmem:[#allocation9] ss:$0 sm:$0xff] }
 0x1e8   :  { %3786 = vmatprep.subr.bf16.mxu1 %v4417_v31 }
 0x1ea   :  { %3811 = vmatpush3.bf16.msra.mxu0 %v4422_v18 }
 0x1eb   :  { %3787 = vmatpush3.bf16.msra.mxu1 %v4418_v33  ;;  %3812 = vmatprep.subr.bf16.mxu0 %v4596_v53 }
 0x1ec   :  { %3788 = vmatprep.subr.bf16.mxu1 %v4419_v38 }
 0x1ee   :  { %3813 = vmatpush3.bf16.msra.mxu0 %v4423_v43 }
 0x1ef   :  { %3789 = vmatpush3.bf16.msra.mxu1 %v4420_v39  ;;  %3814 = vmatprep.subr.bf16.mxu0 %v4596_v53 }
 0x1f0   :  { %3828 = vmatprep.subr.bf16.mxu1 %v4596_v53 }
 0x1f2   :  { %3815 = vmatpush3.bf16.msra.mxu0 %v4424_v51 }
 0x1f3   :  { %3816 = vmatprep.subr.bf16.mxu0 %v4596_v53 }
 0x1f6   :  { %3817 = vmatpush3.bf16.msra.mxu0 %v4425_v55 }
 0x1f7   :  { %3818 = vmatprep.subr.bf16.mxu0 %v4596_v53 }
 0x1fa   :  { %v2577_v28 = vpop.f32.mrf.mxu1  ;;  %3819 = vmatpush3.bf16.msra.mxu0 %v4426_v25 }
 0x1fb   :  { %v2578_v44 = vadd.f32 %v2577_v28, %v489_v42  ;;  %3820 = vmatprep.subr.bf16.mxu0 %v4596_v53  ;;  %v3739_v42 = vld [vmem:[#allocation10] ss:$0 sm:$0xff] }
 0x1fc   :  { %v2579_v30 = vpop.f32.mrf.mxu1 }
 0x1fd   :  { %v2580_v46 = vadd.f32 %v2579_v30, %v493_v22 }
 0x1fe   :  { %v2581_v34 = vpop.f32.mrf.mxu1  ;;  %3821 = vmatpush3.bf16.msra.mxu0 %v4427_v36 }
 0x1ff   :  { %3822 = vmatprep.subr.bf16.mxu0 %v4596_v53 }
 0x200   :  { %v2582_v35 = vpop.f32.mrf.mxu1 }
 0x202   :  { %3823 = vmatpush3.bf16.msra.mxu0 %v4428_v26 }
 0x219   :  { %v2618_v45 = vpop.f32.mrf.mxu0 }
 0x21a   :  { %v2619_v16 = vadd.f32 %v2618_v45, %v2578_v44 }
 0x21b   :  { %v2620_v48 = vpop.f32.mrf.mxu0 }
 0x21c   :  { %v2621_v49 = vadd.f32 %v2620_v48, %v2580_v46 }
 0x21d   :  { %v2622_v50 = vpop.f32.mrf.mxu0 }
 0x21e   :  { %v3748_v50 = vld [vmem:[#allocation12] ss:$0 sm:$0xff] }
 0x21f   :  { %v2623_v52 = vpop.f32.mrf.mxu0 }
 0x23a   :  { %v2659_v54 = vpop.f32.mrf.mxu1 }
 0x23b   :  { %v2660_v63 = vadd.f32 %v2659_v54, %v2619_v16 }
 0x23c   :  { %v2661_v56 = vpop.f32.mrf.mxu1 }
 0x23d   :  { %v2662_v0 = vadd.f32 %v2661_v56, %v2621_v49 }
 0x23e   :  { %v2663_v57 = vpop.f32.mrf.mxu1 }
 0x240   :  { %v2664_v58 = vpop.f32.mrf.mxu1 }
 0x259   :  { %v2700_v59 = vpop.f32.mrf.mxu0 }
 0x25a   :  { %v2701_v1 = vadd.f32 %v2700_v59, %v2660_v63 }
 0x25b   :  { %v2702_v60 = vpop.f32.mrf.mxu0 }
 0x25c   :  { %v2703_v4 = vadd.f32 %v2702_v60, %v2662_v0 }
 0x25d   :  { %v2704_v32 = vpop.f32.mrf.mxu0 }
 0x25f   :  { %v2705_v61 = vpop.f32.mrf.mxu0 }
 0x279   :  { %v2782_v3 = vpop.f32.mrf.mxu0 }
 0x27a   :  { %v2741_v2 = vpop.f32.mrf.mxu1 }
 0x27b   :  { %v2742_v5 = vadd.f32 %v2741_v2, %v2701_v1  ;;  %v2784_v9 = vpop.f32.mrf.mxu0 }
 0x27c   :  { %v2743_v8 = vpop.f32.mrf.mxu1 }
 0x27d   :  { %v2783_v10 = vadd.f32 %v2782_v3, %v2742_v5  ;;  %v2744_v11 = vadd.f32 %v2743_v8, %v2703_v4  ;;  %v2786_v13 = vpop.f32.mrf.mxu0 }
 0x27e   :  { %v2745_v12 = vpop.f32.mrf.mxu1 }
 0x27f   :  { %v2785_v14 = vadd.f32 %v2784_v9, %v2744_v11  ;;  %v2791_v15 = vmax.f32 %v2783_v10, 0.0  ;;  %v2787_v17 = vpop.f32.mrf.mxu0 }
 0x280   :  { %v2746_v19 = vpop.f32.mrf.mxu1 }
 0x281   :  { %v2792_v62 = vmax.f32 %v2785_v14, 0.0  ;;  %v2795_v21 = vpack.c.bf16 %v2791_v15, %v2791_v15 }
 0x283   :  { %v2796_v20 = vpack.c.bf16 %v2792_v62, %v2792_v62 }
 0x285   :  { %3132 = vmatprep.mubr.bf16.mxu1 %v2796_v20 }
 0x286   :  { %3133 = vmatmul.mubr.bf16.vlgmr.msra.gmra.mxu1 %v2795_v21 }
 0x287   :  { %3832 = vmatprep.mubr.msk.bf16.mxu1 %vm4597_vm0, %v4596_v53  ;;  %3829 = vmatpush3.bf16.msra.mxu1 %v4429_v27 }
 0x288   :  { %3830 = vmatprep.subr.bf16.mxu1 %v4596_v53 }
 0x28b   :  { %3831 = vmatpush3.bf16.msra.mxu1 %v4430_v41 }
 0x2a5   :  { %v3768_v7 = vpop.f32.mrf.mxu0 }
 0x2a7   :  { %v3769_v37 = vpop.f32.mrf.mxu0 }
 0x2a8   :  { %v3770_v47 = vadd.f32 %v3769_v37, %v3768_v7 }
 0x2a9   :  { %v3771_v6 = vpop.f32.mrf.mxu0 }
 0x2aa   :  { %v3095_v31 = vadd.f32 %v3770_v47, %v3706_v29 }
 0x2ab   :  { %v3772_v23 = vpop.f32.mrf.mxu0 }
 0x346   :  { %v3790_v28 = vpop.f32.mrf.mxu1 }
 0x348   :  { %v3791_v30 = vpop.f32.mrf.mxu1 }
 0x349   :  { %v3792_v33 = vadd.f32 %v3791_v30, %v3790_v28 }
 0x34a   :  { %v3793_v34 = vpop.f32.mrf.mxu1 }
 0x34b   :  { %v3135_v35 = vadd.f32 %v3792_v33, %v3095_v31 }
 0x34c   :  { %v3794_v38 = vpop.f32.mrf.mxu1 }
 0x34d   :  { %v3140_v39 = vmax.f32 %v3135_v35, 0.0 }
 0x34f   :  { %v3141_v40 = vpack.c.bf16 %v3140_v39, %v3140_v39 }
 0x351   :  { %3825 = vmatmul.mubr.bf16.vlgmr.msra.gmra.mxu0 %v3141_v40 }
 0x411   :  { %v3247_v22 = vpop.f32.mrf.mxu0 }
 0x412   :  { %v3248_v44 = vadd.f32 %v3739_v42, %v3247_v22 }
 0x413   :  { %v3826_v45 = vpop.f32.mrf.mxu0 }
 0x414   :  { %v3253_v46 = vmax.f32 %v3248_v44, 0.0 }
 0x415   :  { %v3250_v16 = vpop.f32.mrf.mxu0 }
 0x416   :  { %v3254_v48 = vpack.c.bf16 %v3253_v46, %v3253_v46 }
 0x417   :  { %v3827_v49 = vpop.f32.mrf.mxu0 }
 0x418   :  { %3833 = vmatmul.mubr.msk.bf16.vlgmr.msra.gmra.mxu1 %vm3278_vm1, %v3254_v48 }
 0x4d8   :  { %v3316_v52 = vpop.f32.mrf.mxu1 }
 0x4d9   :  { %v3317_v24 = vadd.f32 %v3748_v50, %v3316_v52 }
 0x4da   :  { %v3834_v53 = vpop.f32.mrf.mxu1 }
 0x4db   :  { %v3323_v18 = vsel %vm3322_vm2, %v3317_v24, -inf }
 0x4dc   :  { %3324 = vmax.xlane.f32.xlu0 %v3323_v18  ;;  %v3319_v43 = vpop.f32.mrf.mxu1 }
 0x4de   :  { %v3835_v51 = vpop.f32.mrf.mxu1 }
 0x565   :  { %v3325_v54 = vpop.xlane.xlu0 %3324 }
 0x566   :  { %v3326_v55 = vsub.f32 %v3317_v24, %v3325_v54 }
 0x568   :  { %v3327_v56 = vmul.f32 1.442695, %v3326_v55 }
 0x56a   :  { %4431 = vpow2.f32 %v3327_v56 }
 0x577   :  { %v4432_v57 = vpop.eup %4431 }
 0x578   :  { %v3329_v58 = vsel %vm3322_vm2, %v4432_v57, 0.0 }
 0x579   :  { %3330 = vadd.xlane.f32.xlu0 %v3329_v58 }
 0x602   :  { %v3331_v59 = vpop.xlane.xlu0 %3330 }
 0x603   :  { %4433 = vrcp.f32 %v3331_v59 }
 0x610   :  { %v4434_v60 = vpop.eup %4433 }
 0x611   :  { %v3333_v32 = vmul.f32 %v4434_v60, %v4432_v57 }
 0x613   :  { %3334 = vst.msk [vmem:[%s4813_s9] sm:$0xff] %vm3322_vm2, %v3333_v32 }
 0x614   :  { %3339 = vsyncpa [#allocation3], 1 }
 0x615   :  { %3340 = vsyncpa [#allocation5], 1 }
 0x616   :  { %3341 = vsyncpa [#allocation8], 1 }
 0x617   :  { %3342 = vsyncpa [#allocation11], 1 }

</bundles_post_ra>
